<compile_context>
chip_gen: v7x
topology: tpu7x:2x2x1
jax: 0.10.0
libtpu: 0.0.40
codegen_flags: <defaults>
</compile_context>

<pallas_src>
import math
from functools import partial

import jax
import jax.numpy as jnp
from jax.experimental import pallas as pl
from jax.experimental.pallas import tpu as pltpu


def _mha_kernel(q_ref, k_ref, v_ref, mask_ref,
                wq_ref, bq_ref, wk_ref, bk_ref, wv_ref, bv_ref,
                wo_ref, bo_ref, out_ref,
                kh_scr, vh_scr,
                *, heads, d_k, exp_bf16):
    tq = q_ref.shape[1]
    skv = k_ref.shape[1]
    d_model = heads * d_k

    # ---- K/V projections: once per batch (query-tile index 0), cached in VMEM.
    @pl.when(pl.program_id(1) == 0)
    def _():
        xk = k_ref[0]                                   # (Skv, D) bf16
        xv = v_ref[0]                                   # (Skv, D) bf16
        k_proj = jnp.dot(xk, wk_ref[...],
                         preferred_element_type=jnp.float32) + bk_ref[...]
        v_proj = jnp.dot(xv, wv_ref[...],
                         preferred_element_type=jnp.float32) + bv_ref[...]
        kh_scr[...] = jnp.transpose(
            k_proj.reshape(skv, heads, d_k), (1, 0, 2)).astype(jnp.bfloat16)
        vh_scr[...] = jnp.transpose(
            v_proj.reshape(skv, heads, d_k), (1, 0, 2)).astype(jnp.bfloat16)

    # Additive mask bias, computed ONCE per tile (not per head): (1, 1, Skv) f32.
    bias = jnp.where(mask_ref[0] == 0,
                     jnp.float32(-1e9), jnp.float32(0.0))[None]

    inv_sqrt_dk = jnp.float32(1.0 / math.sqrt(float(d_k)))

    # ---- Q projection for this query tile, 1/sqrt(d_k) folded in once.
    xq = q_ref[0]                                       # (TQ, D) bf16
    q_proj = jnp.dot(xq, wq_ref[...],
                     preferred_element_type=jnp.float32) + bq_ref[...]
    q_proj = q_proj * inv_sqrt_dk
    qh = jnp.transpose(q_proj.reshape(tq, heads, d_k), (1, 0, 2)).astype(jnp.bfloat16)

    # ---- Scores for ALL heads in one batched contraction (no per-head loop).
    scores = jnp.einsum("hqd,hkd->hqk", qh, kh_scr[...],
                        preferred_element_type=jnp.float32)    # (H, TQ, Skv)
    scores = scores + bias

    # ---- Numerically-stable softmax; normalization deferred to after P@V.
    m = jnp.max(scores, axis=-1, keepdims=True)
    s = scores - m                                             # f32 (mask stays f32)
    if exp_bf16:
        e = jnp.exp(s.astype(jnp.bfloat16))                    # bf16 EUP (v6e/v7x)
        l = jnp.sum(e.astype(jnp.float32), axis=-1, keepdims=True)
        p_b = e
    else:
        e = jnp.exp(s)                                         # f32 path (v5e)
        l = jnp.sum(e, axis=-1, keepdims=True)
        p_b = e.astype(jnp.bfloat16)

    # P@V on the UNnormalized exponentials (f32 accumulation), then scale the
    # (H, TQ, d_k) result by 1/l — Skv/d_k fewer multiplies than scaling p.
    attn = jnp.einsum("hqk,hkd->hqd", p_b, vh_scr[...],
                      preferred_element_type=jnp.float32)      # (H, TQ, d_k)
    attn = attn * pl.reciprocal(l, approx=True)

    # Head "concat" = single transpose + reshape (no per-head concatenate).
    concat = jnp.transpose(attn, (1, 0, 2)).reshape(tq, d_model).astype(jnp.bfloat16)

    out = jnp.dot(concat, wo_ref[...],
                  preferred_element_type=jnp.float32) + bo_ref[...]
    # NOTE: for real models keep d_model a multiple of 128 so this store is
    # lane-dense (unmasked vst); the demo D=32 is tiny either way.
    out_ref[0] = out.astype(out_ref.dtype)


def _device_kind() -> str:
    try:
        return jax.devices()[0].device_kind.lower()
    except Exception:
        return ""


def _vmem_capacity_bytes() -> int:
    try:
        return int(pltpu.get_tpu_info().vmem_capacity_bytes)
    except Exception:
        return 64 * 2**20          # conservative: v7x per-TensorCore VMEM


def _pick_tq(sq, skv, heads, requested):
    """Query tile size: score/exp temporaries (~3*H*TQ*Skv*4 B) <= ~24 MiB."""
    budget = 24 * 2**20
    per_row = max(1, 3 * heads * skv * 4)
    cap = max(8, budget // per_row)
    tq = int(min(requested, sq, cap))
    while sq % tq != 0:            # keep Sq evenly tiled
        tq -= 1
    return tq


def _vmem_bytes_estimate(tq, skv, d_model, heads):
    """Rough per-grid-step VMEM working set (bytes)."""
    f32, b16, i32 = 4, 2, 4
    d_k = d_model // heads
    io = 2 * tq * d_model * (b16 + f32)            # q in (bf16) + out (f32), dbl-buffered
    kv = 2 * 2 * skv * d_model * b16               # k, v inputs, dbl-buffered
    msk = 2 * skv * i32
    wts = 4 * d_model * d_model * b16 + 4 * d_model * f32     # single-buffered
    cache = 2 * skv * d_model * b16                # kh / vh scratch
    proj = (tq + 2 * skv) * d_model * f32          # projection temporaries
    scr = 3 * heads * tq * skv * f32               # scores / exp temporaries
    att = heads * tq * d_k * f32 + tq * d_model * (f32 + b16)
    return io + kv + msk + wts + cache + proj + scr + att


def multi_head_attention(q, k, v, mask, params, *, heads, tq=256):
    """q: (B, Sq, D), k/v: (B, Skv, D), mask: (B, 1, Skv). Returns (B, Sq, D)."""
    B, Sq, D = q.shape
    Skv = k.shape[1]
    assert D % heads == 0
    d_k = D // heads

    TQ = _pick_tq(Sq, Skv, heads, tq)

    bf16 = jnp.bfloat16
    # bf16 activation I/O: halves DMA bytes / double-buffer footprint; MXU
    # operands are bf16 anyway.  Output keeps the original dtype.
    q_b = q.astype(bf16)
    k_b = k.astype(bf16)
    v_b = v.astype(bf16)

    # nn.Linear weights are (out, in); pre-transpose + pre-cast to bf16.
    wq_t = params["wq"].T.astype(bf16)
    wk_t = params["wk"].T.astype(bf16)
    wv_t = params["wv"].T.astype(bf16)
    wo_t = params["wo"].T.astype(bf16)
    bq = params["bq"].reshape(1, D).astype(jnp.float32)
    bk = params["bk"].reshape(1, D).astype(jnp.float32)
    bv = params["bv"].reshape(1, D).astype(jnp.float32)
    bo = params["bo"].reshape(1, D).astype(jnp.float32)

    mask_i = mask.astype(jnp.int32)

    kind = _device_kind()
    exp_bf16 = bool(kind) and ("v5" not in kind)   # v5e has no bf16 EUP path

    kernel = partial(_mha_kernel, heads=heads, d_k=d_k, exp_bf16=exp_bf16)

    # Grid-invariant weights/biases: single-buffer to avoid duplicating them
    # in VMEM (matters most under v7x's 64 MiB VMEM).
    w_spec = pl.BlockSpec((D, D), lambda b, i: (0, 0), pipeline_mode=pl.Buffered(1))
    b_spec = pl.BlockSpec((1, D), lambda b, i: (0, 0), pipeline_mode=pl.Buffered(1))

    est = _vmem_bytes_estimate(TQ, Skv, D, heads)
    vmem_cap = _vmem_capacity_bytes()
    vmem_limit = int(min(int(0.85 * vmem_cap), max(32 * 2**20, 2 * est)))

    return pl.pallas_call(
        kernel,
        out_shape=jax.ShapeDtypeStruct((B, Sq, D), q.dtype),
        grid=(B, Sq // TQ),
        in_specs=[
            pl.BlockSpec((1, TQ, D), lambda b, i: (b, i, 0)),    # q tile
            pl.BlockSpec((1, Skv, D), lambda b, i: (b, 0, 0)),   # k (full per batch)
            pl.BlockSpec((1, Skv, D), lambda b, i: (b, 0, 0)),   # v (full per batch)
            pl.BlockSpec((1, 1, Skv), lambda b, i: (b, 0, 0)),   # mask
            w_spec, b_spec,                                      # wq, bq
            w_spec, b_spec,                                      # wk, bk
            w_spec, b_spec,                                      # wv, bv
            w_spec, b_spec,                                      # wo, bo
        ],
        out_specs=pl.BlockSpec((1, TQ, D), lambda b, i: (b, i, 0)),
        scratch_shapes=[
            pltpu.VMEM((heads, Skv, d_k), bf16),   # cached K heads (per batch)
            pltpu.VMEM((heads, Skv, d_k), bf16),   # cached V heads (per batch)
        ],
        compiler_params=pltpu.CompilerParams(
            # Sq axis is "arbitrary": it carries the cached K/V scratch.
            dimension_semantics=("parallel", "arbitrary"),
            vmem_limit_bytes=vmem_limit),
    )(q_b, k_b, v_b, mask_i, wq_t, bq, wk_t, bk, wv_t, bv, wo_t, bo)


def _reference(q, k, v, mask, params, *, heads):
    """Pure-JAX f32 reference mirroring the PyTorch module (eval mode)."""
    B, Sq, D = q.shape
    d_k = D // heads

    def lin(x, w, b):
        return x @ w.T + b

    Q = lin(q, params["wq"], params["bq"]).reshape(B, -1, heads, d_k).transpose(0, 2, 1, 3)
    K = lin(k, params["wk"], params["bk"]).reshape(B, -1, heads, d_k).transpose(0, 2, 1, 3)
    V = lin(v, params["wv"], params["bv"]).reshape(B, -1, heads, d_k).transpose(0, 2, 1, 3)

    scores = jnp.einsum("bhqd,bhkd->bhqk", Q, K) / jnp.sqrt(jnp.float32(d_k))
    m = mask[:, None, :, :]  # (B,1,1,Skv)
    scores = jnp.where(m == 0, -1e9, scores)
    probs = jax.nn.softmax(scores, axis=-1)
    out = jnp.einsum("bhqk,bhkd->bhqd", probs, V)
    concat = out.transpose(0, 2, 1, 3).reshape(B, -1, D)
    return lin(concat, params["wo"], params["bo"])


if __name__ == "__main__":
    B, Sq, Skv, D, H = 2, 8, 8, 32, 4

    key = jax.random.PRNGKey(0)
    keys = jax.random.split(key, 12)

    q = jax.random.normal(keys[0], (B, Sq, D), dtype=jnp.float32)
    k = jax.random.normal(keys[1], (B, Skv, D), dtype=jnp.float32)
    v = jax.random.normal(keys[2], (B, Skv, D), dtype=jnp.float32)

    # mask: (B, 1, Skv); last two key positions of batch 1 are masked out.
    mask = jnp.ones((B, 1, Skv), dtype=jnp.int32)
    mask = mask.at[1, 0, -2:].set(0)

    bound = 1.0 / math.sqrt(D)

    def init_w(kk):
        return jax.random.uniform(kk, (D, D), jnp.float32, -bound, bound)

    def init_b(kk):
        return jax.random.uniform(kk, (D,), jnp.float32, -bound, bound)

    params = {
        "wq": init_w(keys[3]), "bq": init_b(keys[4]),
        "wk": init_w(keys[5]), "bk": init_b(keys[6]),
        "wv": init_w(keys[7]), "bv": init_b(keys[8]),
        "wo": init_w(keys[9]), "bo": init_b(keys[10]),
    }

    out = multi_head_attention(q, k, v, mask, params, heads=H)
    out = jax.block_until_ready(out)

    ref = _reference(q, k, v, mask, params, heads=H)
    assert out.shape == (B, Sq, D)
    # bf16 activations/weights/exp + approximate reciprocal -> bf16-level tolerance.
    assert jnp.allclose(out, ref, atol=7.5e-2, rtol=7.5e-2), "mismatch vs reference"

    print("KERNEL_OK")
</pallas_src>

<mosaic_0001>
module attributes {stable_mosaic.version = 11 : i64} {
  func.func @_mha_kernel(%arg0: i32, %arg1: i32, %arg2: memref<1x8x32xbf16, #tpu.memory_space<vmem>>, %arg3: memref<1x8x32xbf16, #tpu.memory_space<vmem>>, %arg4: memref<1x8x32xbf16, #tpu.memory_space<vmem>>, %arg5: memref<1x1x8xi32, #tpu.memory_space<vmem>>, %arg6: memref<32x32xbf16, #tpu.memory_space<vmem>>, %arg7: memref<1x32xf32, #tpu.memory_space<vmem>>, %arg8: memref<32x32xbf16, #tpu.memory_space<vmem>>, %arg9: memref<1x32xf32, #tpu.memory_space<vmem>>, %arg10: memref<32x32xbf16, #tpu.memory_space<vmem>>, %arg11: memref<1x32xf32, #tpu.memory_space<vmem>>, %arg12: memref<32x32xbf16, #tpu.memory_space<vmem>>, %arg13: memref<1x32xf32, #tpu.memory_space<vmem>>, %arg14: memref<1x8x32xf32, #tpu.memory_space<vmem>>, %arg15: memref<4x8x8xbf16, #tpu.memory_space<vmem>>, %arg16: memref<4x8x8xbf16, #tpu.memory_space<vmem>>) attributes {dimension_semantics = [#tpu.dimension_semantics<parallel>, #tpu.dimension_semantics<arbitrary>], iteration_bounds = array<i64: 2, 1>, scalar_prefetch = 0 : i64, scratch_operands = 2 : i64, tpu.core_type = #tpu.core_type<tc>, window_params = [{transform_indices = @transform_0, window_bounds = array<i64: 1, 8, 32>}, {transform_indices = @transform_1, window_bounds = array<i64: 1, 8, 32>}, {transform_indices = @transform_2, window_bounds = array<i64: 1, 8, 32>}, {transform_indices = @transform_3, window_bounds = array<i64: 1, 1, 8>}, {pipeline_mode = #tpu.pipeline_mode<synchronous>, transform_indices = @transform_4, window_bounds = array<i64: 32, 32>}, {pipeline_mode = #tpu.pipeline_mode<synchronous>, transform_indices = @transform_5, window_bounds = array<i64: 1, 32>}, {pipeline_mode = #tpu.pipeline_mode<synchronous>, transform_indices = @transform_6, window_bounds = array<i64: 32, 32>}, {pipeline_mode = #tpu.pipeline_mode<synchronous>, transform_indices = @transform_7, window_bounds = array<i64: 1, 32>}, {pipeline_mode = #tpu.pipeline_mode<synchronous>, transform_indices = @transform_8, window_bounds = array<i64: 32, 32>}, {pipeline_mode = #tpu.pipeline_mode<synchronous>, transform_indices = @transform_9, window_bounds = array<i64: 1, 32>}, {pipeline_mode = #tpu.pipeline_mode<synchronous>, transform_indices = @transform_10, window_bounds = array<i64: 32, 32>}, {pipeline_mode = #tpu.pipeline_mode<synchronous>, transform_indices = @transform_11, window_bounds = array<i64: 1, 32>}, {transform_indices = @transform_12, window_bounds = array<i64: 1, 8, 32>}]} {
    %c0_i32 = arith.constant 0 : i32
    %0 = arith.cmpi eq, %arg1, %c0_i32 : i32
    %1 = arith.extui %0 : i1 to i32
    %c0_i32_0 = arith.constant 0 : i32
    %2 = arith.cmpi ne, %1, %c0_i32_0 : i32
    scf.if %2 {
      %c0_32 = arith.constant 0 : index
      %c0_33 = arith.constant 0 : index
      %c0_34 = arith.constant 0 : index
      %52 = vector.load %arg3[%c0_32, %c0_33, %c0_34] : memref<1x8x32xbf16, #tpu.memory_space<vmem>>, vector<1x8x32xbf16>
      %53 = vector.shape_cast %52 : vector<1x8x32xbf16> to vector<8x32xbf16>
      %c0_35 = arith.constant 0 : index
      %c0_36 = arith.constant 0 : index
      %c0_37 = arith.constant 0 : index
      %54 = vector.load %arg4[%c0_35, %c0_36, %c0_37] : memref<1x8x32xbf16, #tpu.memory_space<vmem>>, vector<1x8x32xbf16>
      %55 = vector.shape_cast %54 : vector<1x8x32xbf16> to vector<8x32xbf16>
      %c0_38 = arith.constant 0 : index
      %c0_39 = arith.constant 0 : index
      %56 = vector.load %arg8[%c0_38, %c0_39] : memref<32x32xbf16, #tpu.memory_space<vmem>>, vector<32x32xbf16>
      %cst_40 = arith.constant dense<0.000000e+00> : vector<8x32xf32>
      %57 = tpu.matmul %53, %56, %cst_40 {dimension_numbers = #tpu.dot_dimension_numbers<[1], [0], [0], [1], [0, 0, 1, 1], [], []>} : vector<8x32xbf16>, vector<32x32xbf16>, vector<8x32xf32> -> vector<8x32xf32>
      %c0_41 = arith.constant 0 : index
      %c0_42 = arith.constant 0 : index
      %58 = vector.load %arg9[%c0_41, %c0_42] : memref<1x32xf32, #tpu.memory_space<vmem>>, vector<1x32xf32>
      %59 = vector.broadcast %58 : vector<1x32xf32> to vector<8x32xf32>
      %60 = arith.addf %57, %59 : vector<8x32xf32>
      %c0_43 = arith.constant 0 : index
      %c0_44 = arith.constant 0 : index
      %61 = vector.load %arg10[%c0_43, %c0_44] : memref<32x32xbf16, #tpu.memory_space<vmem>>, vector<32x32xbf16>
      %cst_45 = arith.constant dense<0.000000e+00> : vector<8x32xf32>
      %62 = tpu.matmul %55, %61, %cst_45 {dimension_numbers = #tpu.dot_dimension_numbers<[1], [0], [0], [1], [0, 0, 1, 1], [], []>} : vector<8x32xbf16>, vector<32x32xbf16>, vector<8x32xf32> -> vector<8x32xf32>
      %c0_46 = arith.constant 0 : index
      %c0_47 = arith.constant 0 : index
      %63 = vector.load %arg11[%c0_46, %c0_47] : memref<1x32xf32, #tpu.memory_space<vmem>>, vector<1x32xf32>
      %64 = vector.broadcast %63 : vector<1x32xf32> to vector<8x32xf32>
      %65 = arith.addf %62, %64 : vector<8x32xf32>
      %66 = vector.shape_cast %60 : vector<8x32xf32> to vector<8x4x8xf32>
      %67 = tpu.transpose %66, [1, 0, 2] : vector<8x4x8xf32> -> vector<4x8x8xf32>
      %68 = arith.truncf %67 : vector<4x8x8xf32> to vector<4x8x8xbf16>
      %c0_48 = arith.constant 0 : index
      %c0_49 = arith.constant 0 : index
      %c0_50 = arith.constant 0 : index
      %69 = vector.load %arg15[%c0_48, %c0_49, %c0_50] : memref<4x8x8xbf16, #tpu.memory_space<vmem>>, vector<4x8x8xbf16>
      tpu.vector_store %arg15[%c0_48, %c0_49, %c0_50], %68 {strides = array<i32>} : memref<4x8x8xbf16, #tpu.memory_space<vmem>>, vector<4x8x8xbf16>,
      %70 = vector.shape_cast %65 : vector<8x32xf32> to vector<8x4x8xf32>
      %71 = tpu.transpose %70, [1, 0, 2] : vector<8x4x8xf32> -> vector<4x8x8xf32>
      %72 = arith.truncf %71 : vector<4x8x8xf32> to vector<4x8x8xbf16>
      %c0_51 = arith.constant 0 : index
      %c0_52 = arith.constant 0 : index
      %c0_53 = arith.constant 0 : index
      %73 = vector.load %arg16[%c0_51, %c0_52, %c0_53] : memref<4x8x8xbf16, #tpu.memory_space<vmem>>, vector<4x8x8xbf16>
      tpu.vector_store %arg16[%c0_51, %c0_52, %c0_53], %72 {strides = array<i32>} : memref<4x8x8xbf16, #tpu.memory_space<vmem>>, vector<4x8x8xbf16>,
    } else {
    }
    %c0 = arith.constant 0 : index
    %c0_1 = arith.constant 0 : index
    %c0_2 = arith.constant 0 : index
    %3 = vector.load %arg5[%c0, %c0_1, %c0_2] : memref<1x1x8xi32, #tpu.memory_space<vmem>>, vector<1x1x8xi32>
    %4 = vector.shape_cast %3 : vector<1x1x8xi32> to vector<1x8xi32>
    %c0_i32_3 = arith.constant 0 : i32
    %5 = vector.broadcast %c0_i32_3 : i32 to vector<1x8xi32>
    %6 = arith.cmpi eq, %4, %5 : vector<1x8xi32>
    %cst = arith.constant -1.000000e+09 : f32
    %cst_4 = arith.constant 0.000000e+00 : f32
    %7 = vector.broadcast %cst : f32 to vector<1x8xf32>
    %8 = vector.broadcast %cst_4 : f32 to vector<1x8xf32>
    %9 = arith.select %6, %7, %8 : vector<1x8xi1>, vector<1x8xf32>
    %10 = vector.shape_cast %9 : vector<1x8xf32> to vector<1x1x8xf32>
    %c0_5 = arith.constant 0 : index
    %c0_6 = arith.constant 0 : index
    %c0_7 = arith.constant 0 : index
    %11 = vector.load %arg2[%c0_5, %c0_6, %c0_7] : memref<1x8x32xbf16, #tpu.memory_space<vmem>>, vector<1x8x32xbf16>
    %12 = vector.shape_cast %11 : vector<1x8x32xbf16> to vector<8x32xbf16>
    %c0_8 = arith.constant 0 : index
    %c0_9 = arith.constant 0 : index
    %13 = vector.load %arg6[%c0_8, %c0_9] : memref<32x32xbf16, #tpu.memory_space<vmem>>, vector<32x32xbf16>
    %cst_10 = arith.constant dense<0.000000e+00> : vector<8x32xf32>
    %14 = tpu.matmul %12, %13, %cst_10 {dimension_numbers = #tpu.dot_dimension_numbers<[1], [0], [0], [1], [0, 0, 1, 1], [], []>} : vector<8x32xbf16>, vector<32x32xbf16>, vector<8x32xf32> -> vector<8x32xf32>
    %c0_11 = arith.constant 0 : index
    %c0_12 = arith.constant 0 : index
    %15 = vector.load %arg7[%c0_11, %c0_12] : memref<1x32xf32, #tpu.memory_space<vmem>>, vector<1x32xf32>
    %16 = vector.broadcast %15 : vector<1x32xf32> to vector<8x32xf32>
    %17 = arith.addf %14, %16 : vector<8x32xf32>
    %cst_13 = arith.constant 0.353553385 : f32
    %18 = vector.broadcast %cst_13 : f32 to vector<8x32xf32>
    %19 = arith.mulf %17, %18 : vector<8x32xf32>
    %20 = vector.shape_cast %19 : vector<8x32xf32> to vector<8x4x8xf32>
    %21 = tpu.transpose %20, [1, 0, 2] : vector<8x4x8xf32> -> vector<4x8x8xf32>
    %22 = arith.truncf %21 : vector<4x8x8xf32> to vector<4x8x8xbf16>
    %c0_14 = arith.constant 0 : index
    %c0_15 = arith.constant 0 : index
    %c0_16 = arith.constant 0 : index
    %23 = vector.load %arg15[%c0_14, %c0_15, %c0_16] : memref<4x8x8xbf16, #tpu.memory_space<vmem>>, vector<4x8x8xbf16>
    "tpu.trace_start"() <{level = 10 : i32, message = "hqd,hkd->hqk"}> : () -> ()
    %cst_17 = arith.constant dense<0.000000e+00> : vector<4x8x8xf32>
    %24 = tpu.matmul %22, %23, %cst_17 {dimension_numbers = #tpu.dot_dimension_numbers<[2], [2], [1], [1], [0, 0, 0, 1, 1, 1], [0], [0]>} : vector<4x8x8xbf16>, vector<4x8x8xbf16>, vector<4x8x8xf32> -> vector<4x8x8xf32>
    "tpu.trace_stop"() : () -> ()
    %25 = vector.broadcast %10 : vector<1x1x8xf32> to vector<4x8x8xf32>
    %26 = arith.addf %24, %25 : vector<4x8x8xf32>
    %cst_18 = arith.constant dense<0xFF800000> : vector<4x8xf32>
    %27 = vector.multi_reduction <maximumf>, %26, %cst_18 [2] : vector<4x8x8xf32> to vector<4x8xf32>
    %28 = vector.shape_cast %27 : vector<4x8xf32> to vector<4x8x1xf32>
    %29 = vector.broadcast %28 : vector<4x8x1xf32> to vector<4x8x8xf32>
    %30 = arith.subf %26, %29 : vector<4x8x8xf32>
    %31 = arith.truncf %30 : vector<4x8x8xf32> to vector<4x8x8xbf16>
    %32 = math.exp %31 : vector<4x8x8xbf16>
    %33 = arith.extf %32 : vector<4x8x8xbf16> to vector<4x8x8xf32>
    %cst_19 = arith.constant dense<0.000000e+00> : vector<4x8xf32>
    %34 = vector.multi_reduction <add>, %33, %cst_19 [2] : vector<4x8x8xf32> to vector<4x8xf32>
    %35 = vector.shape_cast %34 : vector<4x8xf32> to vector<4x8x1xf32>
    %c0_20 = arith.constant 0 : index
    %c0_21 = arith.constant 0 : index
    %c0_22 = arith.constant 0 : index
    %36 = vector.load %arg16[%c0_20, %c0_21, %c0_22] : memref<4x8x8xbf16, #tpu.memory_space<vmem>>, vector<4x8x8xbf16>
    "tpu.trace_start"() <{level = 10 : i32, message = "hqk,hkd->hqd"}> : () -> ()
    %cst_23 = arith.constant dense<0.000000e+00> : vector<4x8x8xf32>
    %37 = tpu.matmul %32, %36, %cst_23 {dimension_numbers = #tpu.dot_dimension_numbers<[2], [1], [1], [2], [0, 0, 0, 1, 1, 2], [0], [0]>} : vector<4x8x8xbf16>, vector<4x8x8xbf16>, vector<4x8x8xf32> -> vector<4x8x8xf32>
    "tpu.trace_stop"() : () -> ()
    %38 = tpu.reciprocal %35 {approx = true} : vector<4x8x1xf32> -> vector<4x8x1xf32>
    %39 = vector.broadcast %38 : vector<4x8x1xf32> to vector<4x8x8xf32>
    %40 = arith.mulf %37, %39 : vector<4x8x8xf32>
    %41 = tpu.transpose %40, [1, 0, 2] : vector<4x8x8xf32> -> vector<8x4x8xf32>
    %42 = vector.shape_cast %41 : vector<8x4x8xf32> to vector<8x32xf32>
    %43 = arith.truncf %42 : vector<8x32xf32> to vector<8x32xbf16>
    %c0_24 = arith.constant 0 : index
    %c0_25 = arith.constant 0 : index
    %44 = vector.load %arg12[%c0_24, %c0_25] : memref<32x32xbf16, #tpu.memory_space<vmem>>, vector<32x32xbf16>
    %cst_26 = arith.constant dense<0.000000e+00> : vector<8x32xf32>
    %45 = tpu.matmul %43, %44, %cst_26 {dimension_numbers = #tpu.dot_dimension_numbers<[1], [0], [0], [1], [0, 0, 1, 1], [], []>} : vector<8x32xbf16>, vector<32x32xbf16>, vector<8x32xf32> -> vector<8x32xf32>
    %c0_27 = arith.constant 0 : index
    %c0_28 = arith.constant 0 : index
    %46 = vector.load %arg13[%c0_27, %c0_28] : memref<1x32xf32, #tpu.memory_space<vmem>>, vector<1x32xf32>
    %47 = vector.broadcast %46 : vector<1x32xf32> to vector<8x32xf32>
    %48 = arith.addf %45, %47 : vector<8x32xf32>
    %c0_29 = arith.constant 0 : index
    %c0_30 = arith.constant 0 : index
    %c0_31 = arith.constant 0 : index
    %49 = vector.load %arg14[%c0_29, %c0_30, %c0_31] : memref<1x8x32xf32, #tpu.memory_space<vmem>>, vector<1x8x32xf32>
    %50 = vector.shape_cast %49 : vector<1x8x32xf32> to vector<8x32xf32>
    %51 = vector.shape_cast %48 : vector<8x32xf32> to vector<1x8x32xf32>
    tpu.vector_store %arg14[%c0_29, %c0_30, %c0_31], %51 {strides = array<i32>} : memref<1x8x32xf32, #tpu.memory_space<vmem>>, vector<1x8x32xf32>,
    return
  }
  func.func @transform_0(%arg0: i32, %arg1: i32) -> (i32, i32, i32) {
    %c0_i32 = arith.constant 0 : i32
    %c0_i32_0 = arith.constant 0 : i32
    return %arg0, %arg1, %c0_i32 : i32, i32, i32
  }
  func.func @transform_1(%arg0: i32, %arg1: i32) -> (i32, i32, i32) {
    %c0_i32 = arith.constant 0 : i32
    %c0_i32_0 = arith.constant 0 : i32
    %c0_i32_1 = arith.constant 0 : i32
    return %arg0, %c0_i32, %c0_i32_0 : i32, i32, i32
  }
  func.func @transform_2(%arg0: i32, %arg1: i32) -> (i32, i32, i32) {
    %c0_i32 = arith.constant 0 : i32
    %c0_i32_0 = arith.constant 0 : i32
    %c0_i32_1 = arith.constant 0 : i32
    return %arg0, %c0_i32, %c0_i32_0 : i32, i32, i32
  }
  func.func @transform_3(%arg0: i32, %arg1: i32) -> (i32, i32, i32) {
    %c0_i32 = arith.constant 0 : i32
    %c0_i32_0 = arith.constant 0 : i32
    %c0_i32_1 = arith.constant 0 : i32
    return %arg0, %c0_i32, %c0_i32_0 : i32, i32, i32
  }
  func.func @transform_4(%arg0: i32, %arg1: i32) -> (i32, i32) {
    %c0_i32 = arith.constant 0 : i32
    %c0_i32_0 = arith.constant 0 : i32
    %c0_i32_1 = arith.constant 0 : i32
    return %c0_i32, %c0_i32_0 : i32, i32
  }
  func.func @transform_5(%arg0: i32, %arg1: i32) -> (i32, i32) {
    %c0_i32 = arith.constant 0 : i32
    %c0_i32_0 = arith.constant 0 : i32
    %c0_i32_1 = arith.constant 0 : i32
    return %c0_i32, %c0_i32_0 : i32, i32
  }
  func.func @transform_6(%arg0: i32, %arg1: i32) -> (i32, i32) {
    %c0_i32 = arith.constant 0 : i32
    %c0_i32_0 = arith.constant 0 : i32
    %c0_i32_1 = arith.constant 0 : i32
    return %c0_i32, %c0_i32_0 : i32, i32
  }
  func.func @transform_7(%arg0: i32, %arg1: i32) -> (i32, i32) {
    %c0_i32 = arith.constant 0 : i32
    %c0_i32_0 = arith.constant 0 : i32
    %c0_i32_1 = arith.constant 0 : i32
    return %c0_i32, %c0_i32_0 : i32, i32
  }
  func.func @transform_8(%arg0: i32, %arg1: i32) -> (i32, i32) {
    %c0_i32 = arith.constant 0 : i32
    %c0_i32_0 = arith.constant 0 : i32
    %c0_i32_1 = arith.constant 0 : i32
    return %c0_i32, %c0_i32_0 : i32, i32
  }
  func.func @transform_9(%arg0: i32, %arg1: i32) -> (i32, i32) {
    %c0_i32 = arith.constant 0 : i32
    %c0_i32_0 = arith.constant 0 : i32
    %c0_i32_1 = arith.constant 0 : i32
    return %c0_i32, %c0_i32_0 : i32, i32
  }
  func.func @transform_10(%arg0: i32, %arg1: i32) -> (i32, i32) {
    %c0_i32 = arith.constant 0 : i32
    %c0_i32_0 = arith.constant 0 : i32
    %c0_i32_1 = arith.constant 0 : i32
    return %c0_i32, %c0_i32_0 : i32, i32
  }
  func.func @transform_11(%arg0: i32, %arg1: i32) -> (i32, i32) {
    %c0_i32 = arith.constant 0 : i32
    %c0_i32_0 = arith.constant 0 : i32
    %c0_i32_1 = arith.constant 0 : i32
    return %c0_i32, %c0_i32_0 : i32, i32
  }
  func.func @transform_12(%arg0: i32, %arg1: i32) -> (i32, i32, i32) {
    %c0_i32 = arith.constant 0 : i32
    %c0_i32_0 = arith.constant 0 : i32
    return %arg0, %arg1, %c0_i32 : i32, i32, i32
  }
}

</mosaic_0001>

<bundles_post_ra>
// kernel: tpu_custom_call.1
= control target key start
LH: loop header
LB: loop body
LE: loop exit
PB: predicated region body
PF: predicated region fallthrough
CT: control target
= control target key end

     0   :  { %s3452_s0 = inlined_call_operand.hbm [shape: bf16[2,8,32], index: 0, kind: input, shape index: {}]   ;;  %s3453_s1 = inlined_call_operand.hbm [shape: bf16[2,8,32], index: 1, kind: input, shape index: {}]   ;;  %s3454_s2 = inlined_call_operand.hbm [shape: bf16[2,8,32], index: 2, kind: input, shape index: {}]   ;;  %s3455_s3 = inlined_call_operand.vmem [shape: s32[2,1,8], index: 3, kind: input, shape index: {}]   ;;  %s3456_s4 = inlined_call_operand.hbm [shape: bf16[32,32], index: 4, kind: input, shape index: {}]   ;;  %s3457_s5 = inlined_call_operand.hbm [shape: f32[1,32], index: 5, kind: input, shape index: {}]   ;;  %s3458_s6 = inlined_call_operand.vmem [shape: bf16[32,32], index: 6, kind: input, shape index: {}]   ;;  %s3459_s7 = inlined_call_operand.hbm [shape: f32[1,32], index: 7, kind: input, shape index: {}]   ;;  %s3460_s8 = inlined_call_operand.hbm [shape: bf16[32,32], index: 8, kind: input, shape index: {}]   ;;  %s3461_s9 = inlined_call_operand.hbm [shape: f32[1,32], index: 9, kind: input, shape index: {}]   ;;  %s3462_s10 = inlined_call_operand.vmem [shape: bf16[32,32], index: 10, kind: input, shape index: {}]   ;;  %s3463_s11 = inlined_call_operand.vmem [shape: f32[1,32], index: 11, kind: input, shape index: {}]   ;;  %s3464_s12 = inlined_call_operand.hbm [shape: f32[2,8,32], index: 12, kind: output, shape index: {}]  }
   0x1   :  { %3491 = sst [smem:[#allocation33_spill]] %s3453_s1 }
   0x2   :  { %3492 = sst [smem:[#allocation34_spill]] %s3455_s3 }
   0x3   :  { %3493 = sst [smem:[#allocation35_spill]] %s3456_s4 }
   0x4   :  { %3494 = sst [smem:[#allocation36_spill]] %s3457_s5 }
   0x5   :  { %3495 = sst [smem:[#allocation37_spill]] %s3459_s7 }
   0x6   :  { %3496 = sst [smem:[#allocation38_spill]] %s3462_s10 }
   0x7   :  { %3497 = sst [smem:[#allocation39_spill]] %s3463_s11 }
   0x8   :  { %3498 = sst [smem:[#allocation40_spill]] %s3464_s12 }
   0x9   :  { %17 = vsyncpa [#allocation5], 0 }
   0xa   :  { %19 = vsyncpa [#allocation5 + $0x1], 0 }
   0xb   :  { %20 = vsyncpa [#allocation8], 0 }
   0xc   :  { %22 = vsyncpa [#allocation8 + $0x1], 0 }
   0xd   :  { %23 = vsyncpa [#allocation11], 0 }
   0xe   :  { %24 = vsyncpa [#allocation14], 0 }
   0xf   :  { %25 = vsyncpa [#allocation17], 0 }
  0x10   :  { %26 = vsyncpa [#allocation6], 0 }
  0x11   :  { %28 = vsyncpa [#allocation6 + $0x1], 0  ;;  %s2869_s21 = smov 0   ;;  %s2871_s22 = smov 0  }
  0x12   :  { %s2873_s23 = smov 0   ;;  %s2875_s24 = smov 0  }
  0x13   :  { %s2877_s25 = smov 0   ;;  %s2879_s26 = smov 0  }
  0x14 LB: > { %3499 = sst [smem:[#allocation25_spill]] %s2761_s21  ;;  %s2900_s27 = sadd.s32 4294967295, %s2781_s26   ;;  %s2781_s26 = sphi %s2879_s26, %s34_s26   ;;  %s2777_s25 = sphi %s2877_s25, %s3550_s25   ;;  %s2773_s24 = sphi %s2875_s24, %s3549_s24   ;;  %s2769_s23 = sphi %s2873_s23, %s3553_s23   ;;  %s2765_s22 = sphi %s2871_s22, %s3552_s22   ;;  %s2761_s21 = sphi %s2869_s21, %s3551_s21  }
  0x15   : > { %3500 = sst [smem:[#allocation26_spill]] %s2773_s24  ;;  %p2127_p0 = scmp.ge.s32.totalorder %s2781_s26, 1 }
  0x16   : > { %3501 = sst [smem:[#allocation27_spill]] %s2777_s25  ;;  %p3475_p1 = scmp.eq.s32.totalorder %s2900_s27, 0 }
  0x17   : > { %3502 = sst [smem:[#allocation28_spill]] %s2781_s26  ;;  %p353_p2 = scmp.lt.s32.totalorder %s2781_s26, 3 }
  0x18   : > { %s2783_s29 = smov [#allocation10]   ;;  %s2784_s14 = smov [#allocation13]  }
  0x19   : > { %p2905_p3 = pnand %p2127_p0, %p353_p2  ;;  %s365_s30 = sshll.u32 %s2783_s29, 4  ;;  %s2909_s30 = int_to_ptr.vmem [resolvable:$true] %s365_s30 }
  0x1a   : > { %s393_s15 = sshll.u32 %s2784_s14, 4  ;;  %s3505_s4 = sld [smem:[#allocation35_spill]]  ;;  %s2920_s15 = int_to_ptr.vmem [resolvable:$true] %s393_s15 }
  0x1b   : > { %s3503_s28 = scalar_select %p2905_p3, 1, 0 }
  0x1c   : > { %p2322_p4 = pneg %p2905_p3 }
  0x1e   : > { %p2916_p6 = pnand %p2322_p4, %p3475_p1 }
  0x20   : > { %s3504_s13 = scalar_select %p2916_p6, 1, 0 }
  0x21   : > { %s2453_s18 = scalar_lea.hbm %s3505_s4, 256  ;;  %p2930_p8 = pneg %p2916_p6 }
  0x22   : > { %p2454_p7 = scmp.ne.s32.totalorder %s3505_s4, %s2453_s18  ;;  %p2460_p11 = scmp.lt.u32.totalorder %s2453_s18, %s3505_s4 }
  0x23   : > { %s3506_s29 = scalar_select %p2930_p8, 1, 0 }
  0x24   : > { %p2456_p9 = pnand %p2930_p8, %p2454_p7 }
  0x26   : > { %p2457_p10 = pneg %p2456_p9 }
  0x28   : > { %p2462_p12 = pnand %p2460_p11, %p2457_p10 }
  0x2a   : > { %2465 = shalt.err (!%p2462_p12)
}
  0x2b   : > { %s2466_s16 = scalar_lea.vmem %s2909_s30, 256  ;;  %p2474_p4 = scmp.lt.s32.totalorder %s2909_s30, %s2909_s30 }
  0x2c   : > { %p2467_p13 = scmp.ne.s32.totalorder %s2909_s30, %s2466_s16  ;;  %p2475_p5 = scmp.lt.s32.totalorder %s2466_s16, %s2466_s16 }
  0x2e   : > { %p2469_p0 = pnand %p2467_p13, %p2930_p8  ;;  %p2476_p7 = por %p2475_p5, %p2474_p4 }
  0x30   : > { %p2470_p2 = pneg %p2469_p0 }
  0x32   : > { %p2477_p9 = pnand %p2476_p7, %p2470_p2 }
  0x34   : > { %2480 = shalt.err (!%p2477_p9)
}
  0x35   : > { %s3468_s17 = smov 64   ;;  %s3469_s12 = smov 4  }
  0x36   : > { %2325 = dma.hbm_to_vmem [thread:$0]  (!%p2916_p6), %s3505_s4, 256, %s2909_s30, [#allocation11], %s3468_s17, %s3468_s17, %s3469_s12  }
  0x37   : > { %s3507_s7 = sld [smem:[#allocation37_spill]] }
  0x3d   : > { %s2481_s16 = scalar_lea.hbm %s3507_s7, 16 }
  0x3e   : > { %p2482_p5 = scmp.ne.s32.totalorder %s3507_s7, %s2481_s16  ;;  %p2488_p12 = scmp.lt.u32.totalorder %s2481_s16, %s3507_s7 }
  0x40   : > { %p2484_p10 = pnand %p2482_p5, %p2930_p8 }
  0x42   : > { %p2485_p11 = pneg %p2484_p10 }
  0x44   : > { %p2490_p13 = pnand %p2488_p12, %p2485_p11 }
  0x46   : > { %2493 = shalt.err (!%p2490_p13)
}
  0x47   : > { %s2494_s30 = scalar_lea.vmem %s2920_s15, 16  ;;  %s2501_s10 = scalar_lea.vmem %s2920_s15, 32 }
  0x48   : > { %p2495_p0 = scmp.ne.s32.totalorder %s2920_s15, %s2494_s30  ;;  %p2502_p7 = scmp.lt.s32.totalorder %s2920_s15, %s2920_s15 }
  0x49   : > { %p2503_p9 = scmp.lt.s32.totalorder %s2501_s10, %s2494_s30 }
  0x4a   : > { %p2497_p2 = pnand %p2495_p0, %p2930_p8 }
  0x4b   : > { %p2504_p5 = por %p2503_p9, %p2502_p7 }
  0x4c   : > { %p2498_p4 = pneg %p2497_p2 }
  0x4e   : > { %p2505_p10 = pnand %p2504_p5, %p2498_p4 }
  0x50   : > { %2508 = shalt.err (!%p2505_p10)
}
  0x51   : > { %2331 = dma.hbm_to_vmem [thread:$0]  (!%p2916_p6), %s3507_s7, 16, %s2920_s15, [#allocation14]  }
  0x52   : > { %s2126_s24 = sadd.s32 4294967294, %s2781_s26   ;;  %s46_s18 = sadd.s32 1, %s2777_s25 }
  0x53   : > { %p48_p11 = scmp.ge.s32.totalorder %s46_s18, 2  ;;  %s55_s19 = sadd.s32 1, %s2769_s23 }
  0x54   : > { %p62_p12 = scmp.ne.s32.totalorder %s2769_s23, %s2765_s22  ;;  %p63_p13 = scmp.eq.s32.totalorder %s2781_s26, 0 }
  0x55   : > { %s3555_s18 = smov (%p48_p11, %s46_s18), 0  ;;  %p68_p2 = scmp.ne.s32.totalorder %s2765_s22, %s2761_s21 }
  0x56   : > { %3508 = sst [smem:[#allocation29_spill]] %s3555_s18  ;;  %p2986_p0 = por %p63_p13, %p62_p12 }
  0x57   : > { %s50_s15 = ssub.s32 %s2777_s25, %s3555_s18  ;;  %p340_p4 = scmp.eq.s32.totalorder %s2900_s27, 1 }
  0x58   : > { %p53_p7 = scmp.eq.s32.totalorder %s50_s15, 0  ;;  %p2997_p9 = por %p3475_p1, %p68_p2 }
  0x59   : > { %p3001_p5 = por %p340_p4, %p62_p12  ;;  %p346_p10 = scmp.eq.s32.totalorder %s2126_s24, 1 }
  0x5a   : > { %s3510_s14 = scalar_select %p2997_p9, 1, 0 }
  0x5b   : > { %s3511_s16 = scalar_select %p3001_p5, 1, 0 }
  0x5c   : > { %s3006_s30 = scalar_select %p53_p7, %s2769_s23, %s55_s19  }
  0x5d   : > { %3512 = sst [smem:[#allocation30_spill]] %s3511_s16  ;;  %p3008_p11 = por %p346_p10, %p68_p2 }
  0x5e   : > { %3513 = sst [smem:[#allocation31_spill]] %s3006_s30  ;;  %p2357_p13 = scmp.lt.s32.totalorder %s2781_s26, 2 }
  0x5f   : > { %s3514_s10 = scalar_select %p3008_p11, 1, 0 }
  0x60   : > { %s3470_s3 = sand.u32 1, %s2769_s23   ;;  %s3015_s11 = sshll.u32 %s2777_s25, 6 }
  0x61   : > { %3515 = sst [smem:[#allocation32_spill]] %s3514_s10  ;;  %s3019_s15 = sshll.u32 %s3470_s3, 2 }
  0x62   : > { %p3023_p12 = pnand %p2357_p13, %p2986_p0  ;;  %s453_s24 = sand.u32 1, %s2781_s26  }
  0x63   : > { %s3517_s1 = sld [smem:[#allocation33_spill]]  ;;  %s457_s7 = scalar_lea.vmem [#allocation7], %s3019_s15 }
  0x64   : > { %s3516_s17 = scalar_select %p3023_p12, 1, 0 }
  0x65   : > { %s464_s3 = sshll.u32 %s457_s7, 4  ;;  %s3037_s20 = scalar_lea.sflag [#allocation8], %s453_s24  ;;  %s3035_s3 = int_to_ptr.vmem [resolvable:$true] %s464_s3 }
  0x66   : > { %p3043_p2 = pneg %p3023_p12 }
  0x68   : > { %s3518_s25 = scalar_select %p3043_p2, 1, 0 }
  0x69   : > { %s3032_s4 = scalar_lea.hbm %s3517_s1, %s3015_s11  ;;  %s2514_s30 = scalar_lea.hbm %s3517_s1, 128 }
  0x6a   : > { %s2509_s18 = scalar_lea.hbm %s3032_s4, 64  ;;  %p2515_p10 = scmp.lt.u32.totalorder %s3032_s4, %s3517_s1 }
  0x6b   : > { %p2510_p0 = scmp.ne.s32.totalorder %s3032_s4, %s2509_s18  ;;  %p2516_p13 = scmp.lt.u32.totalorder %s2514_s30, %s2509_s18 }
  0x6c   : > { %p2518_p11 = scmp.lt.u32.totalorder %s2509_s18, %s3032_s4 }
  0x6d   : > { %p2512_p4 = pnand %p3043_p2, %p2510_p0  ;;  %p2517_p1 = por %p2516_p13, %p2515_p10 }
  0x6f   : > { %p2513_p7 = pneg %p2512_p4  ;;  %p2519_p5 = por %p2518_p11, %p2517_p1 }
  0x71   : > { %p2520_p9 = pnand %p2519_p5, %p2513_p7 }
  0x73   : > { %2523 = shalt.err (!%p2520_p9)
}
  0x74   : > { %s2524_s24 = scalar_lea.vmem %s3035_s3, 64  ;;  %s2787_s12 = smov [#allocation7]  }
  0x75   : > { %p2525_p0 = scmp.ne.s32.totalorder %s3035_s3, %s2524_s24  ;;  %s2529_s19 = sshll.u32 %s2787_s12, 4  ;;  %s2530_s19 = int_to_ptr.vmem [resolvable:$false] %s2529_s19 }
  0x76   : > { %s2531_s26 = scalar_lea.vmem %s2530_s19, 128  ;;  %p2532_p6 = scmp.lt.s32.totalorder %s3035_s3, %s2530_s19 }
  0x77   : > { %p2527_p4 = pnand %p2525_p0, %p3043_p2  ;;  %p2533_p8 = scmp.lt.s32.totalorder %s2531_s26, %s2524_s24 }
  0x79   : > { %p2528_p3 = pneg %p2527_p4  ;;  %p2534_p10 = por %p2533_p8, %p2532_p6 }
  0x7b   : > { %p2535_p13 = pnand %p2534_p10, %p2528_p3 }
  0x7d   : > { %2538 = shalt.err (!%p2535_p13)
}
  0x7e   : > { %2344 = dma.hbm_to_vmem [thread:$0]  (!%p3023_p12), %s3032_s4, 64, %s3035_s3, %s3037_s20  }
  0x7f   : > { %s2788_s18 = smov [#allocation12]   ;;  %s2789_s7 = smov [#allocation15]  }
  0x80   : > { %s379_s30 = sshll.u32 %s2788_s18, 4  ;;  %s403_s1 = sshll.u32 %s2789_s7, 4  ;;  %s380_s30 = int_to_ptr.vmem [resolvable:$true] %s379_s30  ;;  %s404_s1 = int_to_ptr.vmem [resolvable:$true] %s403_s1 }
  0x81   : > { %s3519_s5 = sld [smem:[#allocation36_spill]]  ;;  %p3520_p3 = scmp.ne.s32.totalorder %s3506_s29, 0 }
  0x87   : > { %s2539_s19 = scalar_lea.hbm %s3519_s5, 16 }
  0x88   : > { %p2540_p1 = scmp.ne.s32.totalorder %s3519_s5, %s2539_s19  ;;  %p2546_p9 = scmp.lt.u32.totalorder %s2539_s19, %s3519_s5 }
  0x8a   : > { %p2542_p6 = pnand %p2540_p1, %p3520_p3 }
  0x8c   : > { %p2543_p8 = pneg %p2542_p6 }
  0x8e   : > { %p2548_p5 = pnand %p2546_p9, %p2543_p8 }
  0x90   : > { %2551 = shalt.err (!%p2548_p5)
}
  0x91   : > { %s2552_s4 = scalar_lea.vmem %s380_s30, 16  ;;  %s2559_s10 = scalar_lea.vmem %s380_s30, 32 }
  0x92   : > { %p2553_p11 = scmp.ne.s32.totalorder %s380_s30, %s2552_s4  ;;  %p2560_p4 = scmp.lt.s32.totalorder %s380_s30, %s380_s30 }
  0x93   : > { %p2561_p10 = scmp.lt.s32.totalorder %s2559_s10, %s2552_s4 }
  0x94   : > { %p2555_p7 = pnand %p2553_p11, %p3520_p3 }
  0x95   : > { %p2562_p13 = por %p2561_p10, %p2560_p4 }
  0x96   : > { %p2556_p0 = pneg %p2555_p7 }
  0x98   : > { %p2563_p12 = pnand %p2562_p13, %p2556_p0 }
  0x9a   : > { %2566 = shalt.err (!%p2563_p12)
}
  0x9b   : > { %p3521_p1 = scmp.ne.s32.totalorder %s3504_s13, 0  ;;  %s2567_s7 = scalar_lea.hbm %s3460_s8, 256 }
  0x9c   : > { %p2568_p6 = scmp.ne.s32.totalorder %s3460_s8, %s2567_s7  ;;  %p2574_p12 = scmp.lt.u32.totalorder %s2567_s7, %s3460_s8 }
  0x9d   : > { %2328 = dma.hbm_to_vmem [thread:$0]  (!%p3521_p1), %s3519_s5, 16, %s380_s30, [#allocation11]  }
  0x9e   : > { %p2570_p8 = pnand %p2568_p6, %p3520_p3 }
  0xa0   : > { %p2571_p9 = pneg %p2570_p8 }
  0xa2   : > { %p2576_p5 = pnand %p2574_p12, %p2571_p9 }
  0xa4   : > { %2579 = shalt.err (!%p2576_p5)
}
  0xa5   : > { %s2580_s4 = scalar_lea.vmem %s404_s1, 256  ;;  %p2588_p4 = scmp.lt.s32.totalorder %s404_s1, %s404_s1 }
  0xa6   : > { %p2581_p11 = scmp.ne.s32.totalorder %s404_s1, %s2580_s4  ;;  %p2589_p10 = scmp.lt.s32.totalorder %s2580_s4, %s2580_s4 }
  0xa8   : > { %p2583_p7 = pnand %p2581_p11, %p3520_p3  ;;  %p2590_p13 = por %p2589_p10, %p2588_p4 }
  0xaa   : > { %p2584_p0 = pneg %p2583_p7 }
  0xac   : > { %p2591_p2 = pnand %p2590_p13, %p2584_p0 }
  0xae   : > { %2594 = shalt.err (!%p2591_p2)
}
  0xaf   : > { %s3522_s30 = smov 4   ;;  %s3523_s10 = smov 64  }
  0xb0   : > { %2334 = dma.hbm_to_vmem [thread:$0]  (!%p3521_p1), %s3460_s8, 256, %s404_s1, [#allocation14], %s3523_s10, %s3523_s10, %s3522_s30  }
  0xb1   : > { %s2790_s21 = smov [#allocation16]   ;;  %s2595_s19 = scalar_lea.hbm %s3461_s9, 16 }
  0xb2   : > { %s417_s16 = sshll.u32 %s2790_s21, 4  ;;  %p2596_p2 = scmp.ne.s32.totalorder %s3461_s9, %s2595_s19  ;;  %s418_s16 = int_to_ptr.vmem [resolvable:$true] %s417_s16 }
  0xb3   : > { %p2602_p9 = scmp.lt.u32.totalorder %s2595_s19, %s3461_s9 }
  0xb4   : > { %p2598_p6 = pnand %p2596_p2, %p3520_p3 }
  0xb6   : > { %p2599_p8 = pneg %p2598_p6 }
  0xb8   : > { %p2604_p12 = pnand %p2602_p9, %p2599_p8 }
  0xba   : > { %2607 = shalt.err (!%p2604_p12)
}
  0xbb   : > { %s2608_s1 = scalar_lea.vmem %s418_s16, 16  ;;  %s2615_s30 = scalar_lea.vmem %s418_s16, 32 }
  0xbc   : > { %p2609_p5 = scmp.ne.s32.totalorder %s418_s16, %s2608_s1  ;;  %p2616_p0 = scmp.lt.s32.totalorder %s418_s16, %s418_s16 }
  0xbd   : > { %p2617_p4 = scmp.lt.s32.totalorder %s2615_s30, %s2608_s1 }
  0xbe   : > { %p2611_p11 = pnand %p2609_p5, %p3520_p3 }
  0xbf   : > { %p2618_p10 = por %p2617_p4, %p2616_p0 }
  0xc0   : > { %p2612_p7 = pneg %p2611_p11 }
  0xc2   : > { %p2619_p13 = pnand %p2618_p10, %p2612_p7 }
  0xc4   : > { %2622 = shalt.err (!%p2619_p13)
}
  0xc5   : > { %2337 = dma.hbm_to_vmem [thread:$0]  (!%p3521_p1), %s3461_s9, 16, %s418_s16, [#allocation17]  }
  0xc6   : > { %s3128_s18 = scalar_lea.hbm %s3452_s0, %s3015_s11  ;;  %s438_s21 = scalar_lea.vmem [#allocation4], %s3019_s15 }
  0xc7   : > { %s446_s7 = sshll.u32 %s438_s21, 4  ;;  %s3524_s13 = sand.u32 1, %s2769_s23   ;;  %s447_s7 = int_to_ptr.vmem [resolvable:$true] %s446_s7 }
  0xc8   : > { %s435_s12 = scalar_lea.sflag [#allocation5], %s3524_s13  ;;  %s2623_s19 = scalar_lea.hbm %s3128_s18, 64 }
  0xc9   : > { %p2624_p3 = scmp.ne.s32.totalorder %s3128_s18, %s2623_s19  ;;  %p3525_p2 = scmp.ne.s32.totalorder %s3518_s25, 0 }
  0xca   : > { %s2628_s26 = scalar_lea.hbm %s3452_s0, 128  ;;  %p2629_p1 = scmp.lt.u32.totalorder %s3128_s18, %s3452_s0 }
  0xcb   : > { %p2626_p6 = pnand %p2624_p3, %p3525_p2  ;;  %p2630_p9 = scmp.lt.u32.totalorder %s2628_s26, %s2623_s19 }
  0xcc   : > { %p2632_p5 = scmp.lt.u32.totalorder %s2623_s19, %s3128_s18 }
  0xcd   : > { %p2627_p8 = pneg %p2626_p6  ;;  %p2631_p12 = por %p2630_p9, %p2629_p1 }
  0xcf   : > { %p2633_p11 = por %p2632_p5, %p2631_p12 }
  0xd1   : > { %p2634_p7 = pnand %p2633_p11, %p2627_p8 }
  0xd3   : > { %2637 = shalt.err (!%p2634_p7)
}
  0xd4   : > { %s2638_s30 = scalar_lea.vmem %s447_s7, 64  ;;  %s2791_s10 = smov [#allocation4]  }
  0xd5   : > { %p2639_p0 = scmp.ne.s32.totalorder %s447_s7, %s2638_s30  ;;  %s2643_s3 = sshll.u32 %s2791_s10, 4  ;;  %s2644_s3 = int_to_ptr.vmem [resolvable:$false] %s2643_s3 }
  0xd6   : > { %s2645_s5 = scalar_lea.vmem %s2644_s3, 128  ;;  %p2646_p13 = scmp.lt.s32.totalorder %s447_s7, %s2644_s3 }
  0xd7   : > { %p2641_p4 = pnand %p2639_p0, %p3525_p2  ;;  %p2647_p3 = scmp.lt.s32.totalorder %s2645_s5, %s2638_s30 }
  0xd9   : > { %p2642_p10 = pneg %p2641_p4  ;;  %p2648_p6 = por %p2647_p3, %p2646_p13 }
  0xdb   : > { %p2649_p1 = pnand %p2648_p6, %p2642_p10 }
  0xdd   : > { %2652 = shalt.err (!%p2649_p1)
}
  0xde   : > { %p3526_p9 = scmp.ne.s32.totalorder %s3516_s17, 0  ;;  %s3154_s13 = scalar_lea.hbm %s3454_s2, %s3015_s11 }
  0xdf   : > { %s475_s19 = scalar_lea.vmem [#allocation9], %s3019_s15  ;;  %s2653_s24 = scalar_lea.hbm %s3154_s13, 64 }
  0xe0   : > { %2341 = dma.hbm_to_vmem [thread:$0]  (!%p3526_p9), %s3128_s18, 64, %s447_s7, %s435_s12  }
  0xe1   : > { %s482_s16 = sshll.u32 %s475_s19, 4  ;;  %p2654_p8 = scmp.ne.s32.totalorder %s3154_s13, %s2653_s24  ;;  %s483_s16 = int_to_ptr.vmem [resolvable:$true] %s482_s16 }
  0xe2   : > { %s2658_s18 = scalar_lea.hbm %s3454_s2, 128  ;;  %p2659_p11 = scmp.lt.u32.totalorder %s3154_s13, %s3454_s2 }
  0xe3   : > { %p2656_p12 = pnand %p2654_p8, %p3525_p2  ;;  %p2660_p7 = scmp.lt.u32.totalorder %s2658_s18, %s2653_s24 }
  0xe4   : > { %p2662_p4 = scmp.lt.u32.totalorder %s2653_s24, %s3154_s13 }
  0xe5   : > { %p2657_p5 = pneg %p2656_p12  ;;  %p2661_p0 = por %p2660_p7, %p2659_p11 }
  0xe7   : > { %p2663_p10 = por %p2662_p4, %p2661_p0 }
  0xe9   : > { %p2664_p13 = pnand %p2663_p10, %p2657_p5 }
  0xeb   : > { %2667 = shalt.err (!%p2664_p13)
}
  0xec   : > { %s2668_s11 = scalar_lea.vmem %s483_s16, 64  ;;  %s2792_s15 = smov [#allocation9]  }
  0xed   : > { %p2669_p3 = scmp.ne.s32.totalorder %s483_s16, %s2668_s11  ;;  %s2673_s1 = sshll.u32 %s2792_s15, 4  ;;  %s2674_s1 = int_to_ptr.vmem [resolvable:$false] %s2673_s1 }
  0xee   : > { %s2675_s30 = scalar_lea.vmem %s2674_s1, 128  ;;  %p2676_p8 = scmp.lt.s32.totalorder %s483_s16, %s2674_s1 }
  0xef   : > { %p2671_p6 = pnand %p2669_p3, %p3525_p2  ;;  %p2677_p12 = scmp.lt.s32.totalorder %s2675_s30, %s2668_s11 }
  0xf1   : > { %p2672_p1 = pneg %p2671_p6  ;;  %p2678_p9 = por %p2677_p12, %p2676_p8 }
  0xf3   : > { %p2679_p7 = pnand %p2678_p9, %p2672_p1 }
  0xf5   : > { %2682 = shalt.err (!%p2679_p7)
}
  0xf6   : > { %p3527_p11 = scmp.ne.s32.totalorder %s3516_s17, 0  ;;  %p3528_p5 = scmp.ne.s32.totalorder %s3503_s28, 0 }
  0xf7   : > { %s3178_s25 = sand.u32 (!%p3528_p5), 1, %s2765_s22   ;;  %p3529_p2 = scmp.ne.s32.totalorder (!%p3528_p5), %s3510_s14, 0 }
  0xf8   : > { %2347 = dma.hbm_to_vmem [thread:$0]  (!%p3527_p11), %s3154_s13, 64, %s483_s16, %s3037_s20  }
  0xf9   : > { %497 = sbr.rel (%p3528_p5) target bundleno = 1615 (0x64f), region = 68  ;;  %s3181_s10 = sshll.u32 (!%p3528_p5), %s3178_s25, 2 }
  0xfa   : > { %s500_s3 = scalar_lea.sflag (!%p3528_p5), [#allocation5], %s3178_s25  ;;  %s503_s5 = scalar_lea.vmem (!%p3528_p5), [#allocation4], %s3181_s10 }
 0x100   : > { %2736 = dma.done.wait (%p3529_p2), %s500_s3, 64  }
 0x101   : > { %2738 = vsyncadd (%p3529_p2), %s500_s3, 4294967232  ;;  %s508_s28 = sand.u32 1, %s2900_s27   ;;  %s512_s20 = scalar_lea.vmem [#allocation7], %s3181_s10 }
 0x102   : > { %s509_s17 = scalar_lea.sflag [#allocation8], %s508_s28 }
 0x103   : > { %2740 = dma.done.wait (%p3529_p2), %s509_s17, 128  }
 0x104   : > { %2742 = vsyncadd (%p3529_p2), %s509_s17, 4294967168  ;;  %s521_s29 = scalar_lea.vmem [#allocation9], %s3181_s10  ;;  %p3530_p9 = scmp.eq.s32.totalorder %s2900_s27, 0 }
 0x106   : > { %2744 = dma.done.wait (%p3530_p9), [#allocation11], 272   ;;  %p3531_p0 = pmov %p3530_p9 }
 0x108   : > { %2746 = vsyncadd (%p3531_p0), [#allocation11], 4294967024  ;;  %p3532_p4 = pmov %p3531_p0 }
 0x109   : > { %p3533_p10 = pmov %p3531_p0 }
 0x10a   : > { %2748 = dma.done.wait (%p3532_p4), [#allocation14], 272  }
 0x10b   : > { %2750 = vsyncadd (%p3533_p10), [#allocation14], 4294967024  ;;  %p3534_p13 = pmov %p3531_p0 }
 0x10c   : > { %p3535_p3 = pmov %p3531_p0 }
 0x10d   : > { %2752 = dma.done.wait (%p3534_p13), [#allocation17], 16  }
 0x10e   : > { %2754 = vsyncadd (%p3535_p3), [#allocation17], 4294967280  ;;  %v2793_v0 = vmov 0.0   ;;  %vm2794_vm0 = vmmov 0   ;;  %v2429_v1 = vld [vmem:[%s3458_s6] sm:$0xff]   ;;  %v2430_v2 = vld [vmem:[%s3458_s6 + $0x8] sm:$0xff]   ;;  %v753_v31 = vlaneseq }
 0x10f   : > { %2214 = vmatprep.subr.bf16.mxu0 %v2793_v0  ;;  %2218 = vmatprep.mubr.msk.bf16.mxu0 %vm2794_vm0, %v2793_v0  ;;  %v603_v3 = vld [vmem:[%s512_s20] sm:$0xf]  ;;  %vm628_vm1 = vcmask 261120   ;;  %v2431_v4 = vld [vmem:[#allocation10] sm:$0xff]   ;;  %v2432_v6 = vld [vmem:[#allocation10 + $0x8] sm:$0xff]   ;;  %s2795_s19 = smov 104  }
 0x110   : > { %2222 = vmatprep.subr.bf16.mxu1 %v2793_v0  ;;  %2226 = vmatprep.mubr.msk.bf16.mxu1 %vm2794_vm0, %v2793_v0  ;;  %v2433_v5 = vld [vmem:[#allocation15] sm:$0xff]   ;;  %v1050_v7 = vld [vmem:[%s503_s5] sm:$0xf]  ;;  %v2434_v8 = vld [vmem:[#allocation15 + $0x8] sm:$0xff]   ;;  %s2796_s16 = smov 120   ;;  %s2797_s24 = smov 112  }
 0x111   : > { %2215 = vmatpush3.bf16.msra.mxu0 %v2429_v1  ;;  %2223 = vmatpush3.bf16.msra.mxu1 %v2433_v5  ;;  %v604_v9 = vld [vmem:[%s521_s29] sm:$0xf]  ;;  %v2150_v10 = vld [vmem:[#allocation13] ss:$0 sm:$0xff]  ;;  %v2162_v16 = vld [vmem:[#allocation12] ss:$0 sm:$0xff] }
 0x112   : > { %2216 = vmatprep.subr.bf16.mxu0 %v2793_v0  ;;  %2224 = vmatprep.subr.bf16.mxu1 %v2793_v0  ;;  %v2154_v23 = vld [vmem:[#allocation16] ss:$0 sm:$0xff]  ;;  %v2798_v29 = vmov 1983009808   ;;  %v2799_v32 = vmov 1934713408  }
 0x113   : > { %v751_v30 = vunpack.c.l.s4 %v2798_v29  ;;  %v783_v33 = vunpack.c.l.s4 %v2799_v32  ;;  %v3249_v35 = vshrl.u32 %v753_v31, 7  ;;  %vm888_vm2 = vcmask 60416   ;;  %s3536_s26 = sld [smem:[#allocation26_spill]]  ;;  %s3537_s12 = sld [smem:[#allocation34_spill]] }
 0x114   : > { %vm1279_vm3 = vcmask 64512   ;;  %vm1519_vm4 = vcmask 1043456   ;;  %s3538_s30 = sld [smem:[#allocation38_spill]]  ;;  %s2800_s5 = smov 16   ;;  %vm1858_vm6 = vcmask 130048   ;;  %vm1860_vm7 = vcmask 195584  }
 0x115   : > { %2217 = vmatpush3.bf16.msra.mxu0 %v2430_v2  ;;  %2225 = vmatpush3.bf16.msra.mxu1 %v2434_v8  ;;  %v752_v34 = vunpack.c.0.s8 %v751_v30  ;;  %v784_v38 = vunpack.c.0.s8 %v783_v33  ;;  %s2801_s28 = smov 8   ;;  %s2802_s17 = smov 24  }
 0x116   : > { %2230 = vmatprep.subr.bf16.mxu0 %v2793_v0  ;;  %2238 = vmatprep.subr.bf16.mxu1 %v2793_v0  ;;  %s2149_s20 = sshll.u32 %s3178_s25, 3  ;;  %s3539_s21 = sld [smem:[#allocation39_spill]] }
 0x117   : > { %v3252_v39 = vsub.s32 %v752_v34, %v3249_v35  ;;  %v3255_v45 = vsub.s32 %v784_v38, %v3249_v35  ;;  %s3540_s13 = sld [smem:[#allocation30_spill]]  ;;  %s3541_s18 = sld [smem:[#allocation40_spill]] }
 0x118   : > { %2219 = vmatmul.mubr.msk.bf16.vlgmr.msra.gmra.mrb[0].mxu0 %vm628_vm1, %v603_v3  ;;  %2227 = vmatmul.mubr.msk.bf16.vlgmr.msra.gmra.mrb[0].mxu1 %vm628_vm1, %v604_v9 }
 0x119   : > { %2231 = vmatpush3.bf16.msra.mxu0 %v2431_v4  ;;  %2234 = vmatprep.mubr.msk.bf16.mxu0 %vm2794_vm0, %v2793_v0  ;;  %p595_p6 = scmp.lt.s32.totalorder %s3536_s26, 1  ;;  %s2183_s27 = sshll.u32 %s3536_s26, 7 }
 0x11a   : > { %2232 = vmatprep.subr.bf16.mxu0 %v2793_v0  ;;  %2240 = vmatprep.mubr.msk.bf16.mxu1 %vm2794_vm0, %v2793_v0 }
 0x11b   : > { %s596_s4 = scalar_select %p595_p6, %s3536_s26, 1 }
 0x11c   : > { %s1931_s26 = scalar_lea.sflag [#allocation6], %s3178_s25 }
 0x11d   : > { %2233 = vmatpush3.bf16.msra.mxu0 %v2432_v6  ;;  %s597_s11 = scalar_lea.vmem %s3537_s12, %s596_s4  ;;  %s3402_s7 = scalar_lea.hbm %s3541_s18, %s2183_s27 }
 0x11e   : > { %2244 = vmatprep.subr.bf16.mxu0 %v2793_v0  ;;  %p3542_p8 = scmp.ne.s32.totalorder %s3540_s13, 0 }
 0x120   : > { %2235 = vmatmul.mubr.msk.bf16.vlgmr.msra.gmra.mrb[4].mxu0 %vm628_vm1, %v1050_v7 }
 0x121   : > { %2246 = vmatprep.mubr.msk.bf16.mxu0 %vm2794_vm0, %v2793_v0 }
 0x1eb   : > { %v666_v11 = vpop.f32.mrb[0].mxu0  ;;  %v732_v24 = vpop.f32.mrb[0].mxu1 }
 0x1ec   : > { %v667_v12 = vadd.f32 %v2150_v10, %v666_v11  ;;  %v2220_v13 = vpop.f32.mrb[1].mxu0  ;;  %v3244_v25 = vadd.f32 %v2154_v23, %v732_v24  ;;  %v2228_v26 = vpop.f32.mrb[1].mxu1 }
 0x1ed   : > { %v669_v14 = vpop.f32.mrb[2].mxu0  ;;  %v735_v27 = vpop.f32.mrb[2].mxu1 }
 0x1ee   : > { %745 = vrot.lane.b32.xlu1 %v667_v12, %s2795_s19  ;;  %739 = vrot.lane.b32.xlu0 %v667_v12, %s2796_s16  ;;  %v2221_v15 = vpop.f32.mrb[3].mxu0  ;;  %v2229_v28 = vpop.f32.mrb[3].mxu1 }
 0x1f2   : > { %742 = vrot.lane.b32.xlu0 %v667_v12, %s2797_s24 }
 0x1f3   : > { %v1112_v17 = vpop.f32.mrb[4].mxu0 }
 0x1f4   : > { %v1113_v18 = vadd.f32 %v2162_v16, %v1112_v17  ;;  %v2236_v19 = vpop.f32.mrb[5].mxu0 }
 0x1f5   : > { %v1115_v20 = vpop.f32.mrb[6].mxu0 }
 0x1f6   : > { %v3239_v21 = vmul.f32 0.35355338, %v1113_v18  ;;  %v2237_v22 = vpop.f32.mrb[7].mxu0 }
 0x1f8   : > { %1123 = vrot.lane.b32.xlu0 %v3239_v21, %s2797_s24  ;;  %1120 = vrot.lane.b32.xlu1 %v3239_v21, %s2796_s16 }
 0x1fc   : > { %1126 = vrot.lane.b32.xlu1 %v3239_v21, %s2795_s19  ;;  %894 = vrot.lane.b32.xlu0 %v3244_v25, %s2796_s16 }
 0x200   : > { %897 = vrot.lane.b32.xlu1 %v3244_v25, %s2797_s24  ;;  %900 = vrot.lane.b32.xlu0 %v3244_v25, %s2795_s19  ;;  %s594_s19 = scalar_lea.vmem [#allocation18], %s2149_s20 }
 0x201   : > { %s1945_s16 = sshll.u32 %s594_s19, 4  ;;  %s3404_s16 = int_to_ptr.vmem [resolvable:$true] %s1945_s16 }
 0x202   : > { %s2683_s12 = scalar_lea.vmem %s3404_s16, 128 }
 0x203   : > { %p2684_p1 = scmp.ne.s32.totalorder %s3404_s16, %s2683_s12 }
 0x205   : > { %p2685_p12 = pnand %p2684_p1, %p3542_p8 }
 0x207   : > { %p2686_p7 = pneg %p2685_p12 }
 0x260   : > { %v746_v36 = vpop.permute.xlu1 %745  ;;  %v740_v37 = vpop.permute.xlu0 %739 }
 0x261   : > { %v764_v40 = vcombine.low %v740_v37, %v746_v36  ;;  %v765_v41 = vcombine.high %v740_v37, %v746_v36 }
 0x263   : > { %v772_v46 = vrot.slane %v764_v40, %v3252_v39  ;;  %v779_v47 = vrot.slane %v765_v41, %v3252_v39 }
 0x264   : > { %v743_v42 = vpop.permute.xlu0 %742 }
 0x265   : > { %v748_v43 = vcombine.low %v667_v12, %v743_v42  ;;  %v749_v44 = vcombine.high %v667_v12, %v743_v42 }
 0x267   : > { %v756_v48 = vrot.slane %v748_v43, %v3252_v39  ;;  %v763_v49 = vrot.slane %v749_v44, %v3252_v39 }
 0x269   : > { %v780_v50 = vcombine.low %v756_v48, %v772_v46  ;;  %v781_v51 = vcombine.high %v756_v48, %v772_v46  ;;  %v796_v52 = vcombine.low %v763_v49, %v779_v47  ;;  %v797_v53 = vcombine.high %v763_v49, %v779_v47 }
 0x26a   : > { %v1121_v54 = vpop.permute.xlu1 %1120  ;;  %v1124_v59 = vpop.permute.xlu0 %1123 }
 0x26b   : > { %v788_v55 = vrot.slane %v780_v50, %v3255_v45  ;;  %v795_v56 = vrot.slane %v781_v51, %v3255_v45  ;;  %v804_v57 = vrot.slane %v796_v52, %v3255_v45  ;;  %v811_v58 = vrot.slane %v797_v53, %v3255_v45 }
 0x26c   : > { %v1129_v1 = vcombine.low %v3239_v21, %v1124_v59  ;;  %v1130_v2 = vcombine.high %v3239_v21, %v1124_v59 }
 0x26d   : > { %v816_v60 = vcombine.low %v788_v55, %v795_v56  ;;  %v2158_v61 = vcombine.high %v788_v55, %v795_v56  ;;  %v832_v62 = vcombine.low %v804_v57, %v811_v58  ;;  %v2159_v63 = vcombine.high %v804_v57, %v811_v58 }
 0x26e   : > { %v1127_v3 = vpop.permute.xlu1 %1126  ;;  %v1137_v14 = vrot.slane %v1129_v1, %v3252_v39  ;;  %v1144_v15 = vrot.slane %v1130_v2, %v3252_v39 }
 0x26f   : > { %v823_v4 = vrot.slane %v816_v60, %v3252_v39  ;;  %v831_v5 = vrot.slane %v2158_v61, %v3252_v39  ;;  %v839_v6 = vrot.slane %v832_v62, %v3252_v39  ;;  %v847_v7 = vrot.slane %v2159_v63, %v3252_v39 }
 0x270   : > { %v1145_v8 = vcombine.low %v1121_v54, %v1127_v3  ;;  %v1146_v9 = vcombine.high %v1121_v54, %v1127_v3 }
 0x271   : > { %v848_v10 = vcombine.low %v823_v4, %v831_v5  ;;  %v849_v11 = vcombine.high %v823_v4, %v831_v5  ;;  %v864_v12 = vcombine.low %v839_v6, %v847_v7  ;;  %v865_v13 = vcombine.high %v839_v6, %v847_v7 }
 0x272   : > { %v1153_v16 = vrot.slane %v1145_v8, %v3252_v39  ;;  %v1160_v17 = vrot.slane %v1146_v9, %v3252_v39 }
 0x273   : > { %v856_v18 = vrot.slane %v848_v10, %v3255_v45  ;;  %v863_v19 = vrot.slane %v849_v11, %v3255_v45  ;;  %v872_v20 = vrot.slane %v864_v12, %v3255_v45  ;;  %v879_v21 = vrot.slane %v865_v13, %v3255_v45  ;;  %v895_v11 = vpop.permute.xlu0 %894  ;;  %v898_v12 = vpop.permute.xlu1 %897 }
 0x274   : > { %v1161_v22 = vcombine.low %v1137_v14, %v1153_v16  ;;  %v1162_v23 = vcombine.high %v1137_v14, %v1153_v16  ;;  %v1177_v24 = vcombine.low %v1144_v15, %v1160_v17  ;;  %v1178_v26 = vcombine.high %v1144_v15, %v1160_v17 }
 0x275   : > { %v880_v27 = vcombine.low %v856_v18, %v872_v20  ;;  %v881_v28 = vcombine.high %v856_v18, %v872_v20  ;;  %v882_v29 = vcombine.low %v863_v19, %v879_v21  ;;  %v883_v30 = vcombine.high %v863_v19, %v879_v21 }
 0x276   : > { %v1169_v31 = vrot.slane %v1161_v22, %v3255_v45  ;;  %v1176_v32 = vrot.slane %v1162_v23, %v3255_v45  ;;  %v1185_v33 = vrot.slane %v1177_v24, %v3255_v45  ;;  %v1192_v34 = vrot.slane %v1178_v26, %v3255_v45 }
 0x277   : > { %v884_v36 = vpack.c.bf16 %v880_v27, %v880_v27  ;;  %v885_v37 = vpack.c.bf16 %v881_v28, %v881_v28  ;;  %v886_v38 = vpack.c.bf16 %v882_v29, %v882_v29  ;;  %v887_v40 = vpack.c.bf16 %v883_v30, %v883_v30  ;;  %v901_v15 = vpop.permute.xlu0 %900 }
 0x278   : > { %v1197_v41 = vcombine.low %v1169_v31, %v1176_v32  ;;  %v2166_v42 = vcombine.high %v1169_v31, %v1176_v32  ;;  %v1213_v43 = vcombine.low %v1185_v33, %v1192_v34  ;;  %v2167_v44 = vcombine.high %v1185_v33, %v1192_v34 }
 0x279   : > { %889 = vst.msk [vmem:[#allocation2] sm:$0xf] %vm888_vm2, %v884_v36  ;;  %890 = vst.msk [vmem:[#allocation2 + $0x4] sm:$0xf] %vm888_vm2, %v885_v37  ;;  %v903_v13 = vcombine.low %v3244_v25, %v898_v12  ;;  %v904_v14 = vcombine.high %v3244_v25, %v898_v12  ;;  %v919_v16 = vcombine.low %v895_v11, %v901_v15 }
 0x27a   : > { %891 = vst.msk [vmem:[#allocation2 + $0x8] sm:$0xf] %vm888_vm2, %v886_v38  ;;  %892 = vst.msk [vmem:[#allocation2 + $0xc] sm:$0xf] %vm888_vm2, %v887_v40  ;;  %v1204_v46 = vrot.slane %v1197_v41, %v3252_v39  ;;  %v1212_v47 = vrot.slane %v2166_v42, %v3252_v39  ;;  %v1220_v48 = vrot.slane %v1213_v43, %v3252_v39 }
 0x27b   : > { %v1228_v49 = vrot.slane %v2167_v44, %v3252_v39  ;;  %v920_v17 = vcombine.high %v895_v11, %v901_v15  ;;  %v911_v18 = vrot.slane %v903_v13, %v3252_v39  ;;  %v918_v19 = vrot.slane %v904_v14, %v3252_v39 }
 0x27c   : > { %v1229_v50 = vcombine.low %v1204_v46, %v1212_v47  ;;  %v1230_v58 = vcombine.high %v1204_v46, %v1212_v47  ;;  %v927_v20 = vrot.slane %v919_v16, %v3252_v39 }
 0x27d   : > { %v1245_v51 = vcombine.low %v1220_v48, %v1228_v49  ;;  %v1246_v59 = vcombine.high %v1220_v48, %v1228_v49  ;;  %v934_v21 = vrot.slane %v920_v17, %v3252_v39 }
 0x27e   : > { %v1237_v52 = vrot.slane %v1229_v50, %v3255_v45  ;;  %v1244_v3 = vrot.slane %v1230_v58, %v3255_v45  ;;  %v935_v22 = vcombine.low %v911_v18, %v927_v20  ;;  %v936_v23 = vcombine.high %v911_v18, %v927_v20 }
 0x27f   : > { %v1253_v53 = vrot.slane %v1245_v51, %v3255_v45  ;;  %v1260_v4 = vrot.slane %v1246_v59, %v3255_v45  ;;  %v951_v24 = vcombine.low %v918_v19, %v934_v21  ;;  %v952_v26 = vcombine.high %v918_v19, %v934_v21 }
 0x280   : > { %v1269_v54 = vld [vmem:[#allocation2] sm:$0xf]  ;;  %v1270_v55 = vld [vmem:[#allocation2 + $0x4] sm:$0xf]  ;;  %v943_v27 = vrot.slane %v935_v22, %v3255_v45  ;;  %v950_v28 = vrot.slane %v936_v23, %v3255_v45 }
 0x281   : > { %v1284_v56 = vsel %vm1279_vm3, %v1269_v54, 0  ;;  %v1330_v57 = vsel %vm1279_vm3, %v1270_v55, 0  ;;  %v1261_v60 = vcombine.low %v1237_v52, %v1253_v53  ;;  %v1262_v61 = vcombine.high %v1237_v52, %v1253_v53  ;;  %v1271_v62 = vld [vmem:[#allocation2 + $0x8] sm:$0xf]  ;;  %v1272_v63 = vld [vmem:[#allocation2 + $0xc] sm:$0xf] }
 0x282   : > { %2239 = vmatpush3.bf16.xpose.msra.mxu1 %v1284_v56  ;;  %2245 = vmatpush3.bf16.xpose.msra.mxu0 %v1330_v57  ;;  %v1376_v5 = vsel %vm1279_vm3, %v1271_v62, 0  ;;  %v1422_v6 = vsel %vm1279_vm3, %v1272_v63, 0  ;;  %v1263_v7 = vcombine.low %v1244_v3, %v1260_v4  ;;  %v1264_v8 = vcombine.high %v1244_v3, %v1260_v4 }
 0x283   : > { %2250 = vmatprep.subr.bf16.mxu1 %v2793_v0  ;;  %2256 = vmatprep.subr.bf16.mxu0 %v2793_v0  ;;  %v1265_v1 = vpack.c.bf16 %v1261_v60, %v1261_v60  ;;  %v1266_v2 = vpack.c.bf16 %v1262_v61, %v1262_v61  ;;  %v959_v25 = vrot.slane %v951_v24, %v3255_v45  ;;  %v1047_v61 = vld [vmem:[%s597_s11] sm:$0x1]  ;;  %v1276_v62 = vsub.s32 0, %v3249_v35  ;;  %s2803_s11 = smov [#allocation18]  }
 0x284   : > { %v1267_v9 = vpack.c.bf16 %v1263_v7, %v1263_v7  ;;  %v1268_v10 = vpack.c.bf16 %v1264_v8, %v1264_v8  ;;  %v966_v29 = vrot.slane %v952_v26, %v3255_v45  ;;  %v971_v30 = vcombine.low %v943_v27, %v950_v28  ;;  %s2687_s15 = sshll.u32 %s2803_s11, 4  ;;  %s2688_s15 = int_to_ptr.vmem [resolvable:$false] %s2687_s15 }
 0x285   : > { %v2160_v31 = vcombine.high %v943_v27, %v950_v28  ;;  %vm1048_vm5 = vcmp.eq.s32.totalorder %v1047_v61, 0  ;;  %s2689_s1 = scalar_lea.vmem %s2688_s15, 256  ;;  %p2690_p11 = scmp.lt.s32.totalorder %s3404_s16, %s2688_s15 }
 0x286   : > { %v987_v32 = vcombine.low %v959_v25, %v966_v29  ;;  %v2161_v33 = vcombine.high %v959_v25, %v966_v29  ;;  %v978_v34 = vrot.slane %v971_v30, %v3252_v39  ;;  %v1049_v63 = vsel %vm1048_vm5, -1e+09, %v2793_v0  ;;  %p2691_p5 = scmp.lt.s32.totalorder %s2689_s1, %s2683_s12 }
 0x287   : > { %v986_v36 = vrot.slane %v2160_v31, %v3252_v39 }
 0x288   : > { %v994_v37 = vrot.slane %v987_v32, %v3252_v39  ;;  %v1002_v38 = vrot.slane %v2161_v33, %v3252_v39  ;;  %p2692_p2 = por %p2691_p5, %p2690_p11 }
 0x289   : > { %2241 = vmatmul.mubr.msk.bf16.vlgmr.msra.gmra.mrb[4].mxu1 %vm1279_vm3, %v1265_v1  ;;  %2247 = vmatmul.mubr.msk.bf16.vlgmr.msra.gmra.mrb[8].mxu0 %vm1279_vm3, %v1266_v2  ;;  %v1003_v40 = vcombine.low %v978_v34, %v986_v36  ;;  %v1004_v41 = vcombine.high %v978_v34, %v986_v36  ;;  %v1277_v1 = vrot.slane %v1049_v63, %v1276_v62 }
 0x28a   : > { %2251 = vmatpush3.bf16.xpose.msra.mxu1 %v1376_v5  ;;  %2257 = vmatpush3.bf16.xpose.msra.mxu0 %v1422_v6  ;;  %v1019_v42 = vcombine.low %v994_v37, %v1002_v38  ;;  %v1020_v43 = vcombine.high %v994_v37, %v1002_v38  ;;  %p2693_p9 = pnand %p2692_p2, %p2686_p7 }
 0x28b   : > { %2252 = vmatprep.mubr.msk.bf16.mxu1 %vm2794_vm0, %v2793_v0  ;;  %2258 = vmatprep.mubr.msk.bf16.mxu0 %vm2794_vm0, %v2793_v0  ;;  %v1011_v44 = vrot.slane %v1003_v40, %v3255_v45  ;;  %v1018_v46 = vrot.slane %v1004_v41, %v3255_v45 }
 0x28c   : > { %2262 = vmatprep.subr.bf16.mxu1 %v2793_v0  ;;  %2268 = vmatprep.subr.bf16.mxu0 %v2793_v0  ;;  %v1027_v47 = vrot.slane %v1019_v42, %v3255_v45  ;;  %v1034_v48 = vrot.slane %v1020_v43, %v3255_v45 }
 0x28e   : > { %v1035_v49 = vcombine.low %v1011_v44, %v1027_v47  ;;  %v1036_v50 = vcombine.high %v1011_v44, %v1027_v47  ;;  %v1037_v51 = vcombine.low %v1018_v46, %v1034_v48  ;;  %v1038_v52 = vcombine.high %v1018_v46, %v1034_v48 }
 0x290   : > { %v1039_v53 = vpack.c.bf16 %v1035_v49, %v1035_v49  ;;  %v1040_v54 = vpack.c.bf16 %v1036_v50, %v1036_v50  ;;  %v1041_v55 = vpack.c.bf16 %v1037_v51, %v1037_v51  ;;  %v1042_v56 = vpack.c.bf16 %v1038_v52, %v1038_v52 }
 0x291   : > { %2253 = vmatmul.mubr.msk.bf16.vlgmr.msra.gmra.mrb[8].mxu1 %vm1279_vm3, %v1267_v9  ;;  %2259 = vmatmul.mubr.msk.bf16.vlgmr.msra.gmra.mrb[12].mxu0 %vm1279_vm3, %v1268_v10 }
 0x292   : > { %2264 = vmatprep.mubr.msk.bf16.mxu1 %vm2794_vm0, %v2793_v0  ;;  %2270 = vmatprep.mubr.msk.bf16.mxu0 %vm2794_vm0, %v2793_v0  ;;  %1043 = vst.msk [vmem:[#allocation3] sm:$0xf] %vm888_vm2, %v1039_v53  ;;  %1044 = vst.msk [vmem:[#allocation3 + $0x4] sm:$0xf] %vm888_vm2, %v1040_v54 }
 0x293   : > { %1045 = vst.msk [vmem:[#allocation3 + $0x8] sm:$0xf] %vm888_vm2, %v1041_v55  ;;  %1046 = vst.msk [vmem:[#allocation3 + $0xc] sm:$0xf] %vm888_vm2, %v1042_v56 }
 0x299   : > { %v1512_v57 = vld [vmem:[#allocation3] sm:$0xf]  ;;  %v1513_v58 = vld [vmem:[#allocation3 + $0x4] sm:$0xf] }
 0x29a   : > { %v1521_v59 = vsel %vm1519_vm4, %v1512_v57, 0  ;;  %v1567_v60 = vsel %vm1519_vm4, %v1513_v58, 0  ;;  %v1514_v43 = vld [vmem:[#allocation3 + $0x8] sm:$0xf]  ;;  %v1515_v44 = vld [vmem:[#allocation3 + $0xc] sm:$0xf] }
 0x29b   : > { %2263 = vmatpush3.bf16.msra.mxu1 %v1521_v59  ;;  %2269 = vmatpush3.bf16.msra.mxu0 %v1567_v60  ;;  %v1613_v48 = vsel %vm1519_vm4, %v1514_v43, 0  ;;  %v1659_v50 = vsel %vm1519_vm4, %v1515_v44, 0 }
 0x29c   : > { %2274 = vmatprep.subr.bf16.mxu1 %v2793_v0  ;;  %2280 = vmatprep.subr.bf16.mxu0 %v2793_v0 }
 0x35c   : > { %v1320_v2 = vpop.f32.mrb[4].mxu1  ;;  %v1366_v3 = vpop.f32.mrb[8].mxu0 }
 0x35d   : > { %v1321_v4 = vadd.f32 %v1320_v2, %v1277_v1  ;;  %v1367_v5 = vadd.f32 %v1366_v3, %v1277_v1  ;;  %v2242_v6 = vpop.f32.mrb[5].mxu1  ;;  %v2248_v7 = vpop.f32.mrb[9].mxu0 }
 0x35e   : > { %v1323_v8 = vpop.f32.mrb[6].mxu1  ;;  %v1369_v9 = vpop.f32.mrb[10].mxu0 }
 0x35f   : > { %v2243_v10 = vpop.f32.mrb[7].mxu1  ;;  %v2249_v11 = vpop.f32.mrb[11].mxu0  ;;  %v1464_v12 = vsel %vm1279_vm3, %v1321_v4, -inf  ;;  %v1467_v13 = vsel %vm1279_vm3, %v1367_v5, -inf }
 0x360   : > { %1465 = vmax.xlane.f32.xlu1 %v1464_v12  ;;  %1468 = vmax.xlane.f32.xlu0 %v1467_v13 }
 0x364   : > { %v1412_v35 = vpop.f32.mrb[8].mxu1  ;;  %v1458_v14 = vpop.f32.mrb[12].mxu0 }
 0x365   : > { %v1413_v15 = vadd.f32 %v1412_v35, %v1277_v1  ;;  %v1459_v16 = vadd.f32 %v1458_v14, %v1277_v1  ;;  %v2254_v17 = vpop.f32.mrb[9].mxu1  ;;  %v2260_v18 = vpop.f32.mrb[13].mxu0 }
 0x366   : > { %v1415_v19 = vpop.f32.mrb[10].mxu1  ;;  %v1461_v20 = vpop.f32.mrb[14].mxu0 }
 0x367   : > { %v2255_v21 = vpop.f32.mrb[11].mxu1  ;;  %v2261_v22 = vpop.f32.mrb[15].mxu0  ;;  %v1470_v23 = vsel %vm1279_vm3, %v1413_v15, -inf  ;;  %v1473_v24 = vsel %vm1279_vm3, %v1459_v16, -inf }
 0x368   : > { %1471 = vmax.xlane.f32.xlu0 %v1470_v23  ;;  %1474 = vmax.xlane.f32.xlu1 %v1473_v24 }
 0x3ed   : > { %v1466_v26 = vpop.xlane.xlu1 %1465  ;;  %v1469_v27 = vpop.xlane.xlu0 %1468 }
 0x3ee   : > { %v1476_v28 = vsub.f32 %v1321_v4, %v1466_v26  ;;  %v1477_v25 = vsub.f32 %v1367_v5, %v1469_v27 }
 0x3f0   : > { %v1480_v29 = vpack.c.bf16 %v1476_v28, %v1476_v28  ;;  %v1481_v30 = vpack.c.bf16 %v1477_v25, %v1477_v25 }
 0x3f2   : > { %v1485_v31 = vmul.bf16 1069105081, %v1480_v29  ;;  %v1488_v32 = vmul.bf16 1069105081, %v1481_v30 }
 0x3f4   : > { %2437 = vpow.bf16 %v1485_v31 }
 0x3f5   : > { %2439 = vpow.bf16 %v1488_v32  ;;  %v1472_v33 = vpop.xlane.xlu0 %1471  ;;  %v1475_v34 = vpop.xlane.xlu1 %1474 }
 0x3f6   : > { %v1478_v36 = vsub.f32 %v1413_v15, %v1472_v33  ;;  %v1479_v37 = vsub.f32 %v1459_v16, %v1475_v34 }
 0x3f8   : > { %v1482_v38 = vpack.c.bf16 %v1478_v36, %v1478_v36  ;;  %v1483_v40 = vpack.c.bf16 %v1479_v37, %v1479_v37  ;;  %v2435_v37 = vld [vmem:[%s3538_s30] sm:$0xff]  }
 0x3fa   : > { %v1491_v41 = vmul.bf16 1069105081, %v1482_v38  ;;  %v1494_v42 = vmul.bf16 1069105081, %v1483_v40 }
 0x3fc   : > { %2441 = vpow.bf16 %v1491_v41 }
 0x3fd   : > { %2443 = vpow.bf16 %v1494_v42 }
 0x3ff   : > { %v2438_v46 = vpop.eup %2437 }
 0x400   : > { %v2440_v47 = vpop.eup %2439  ;;  %2265 = vmatmul.mubr.msk.bf16.vlgmr.msra.gmra.mrb[12].mxu1 %vm1279_vm3, %v2438_v46  ;;  %v1496_v49 = vunpack.c.l.bf16 %v2438_v46 }
 0x401   : > { %2271 = vmatmul.mubr.msk.bf16.vlgmr.msra.gmra.mrb[16].mxu0 %vm1279_vm3, %v2440_v47  ;;  %2275 = vmatpush3.bf16.msra.mxu1 %v1613_v48  ;;  %v1497_v51 = vunpack.c.l.bf16 %v2440_v47  ;;  %v2436_v48 = vld [vmem:[%s3538_s30 + $0x8] sm:$0xff]  }
 0x402   : > { %2281 = vmatpush3.bf16.msra.mxu0 %v1659_v50  ;;  %v1500_v52 = vsel %vm1279_vm3, %v1496_v49, 0.0  ;;  %2276 = vmatprep.mubr.msk.bf16.mxu1 %vm2794_vm0, %v2793_v0 }
 0x403   : > { %1501 = vadd.xlane.f32.xlu0 %v1500_v52  ;;  %v1503_v53 = vsel %vm1279_vm3, %v1497_v51, 0.0  ;;  %2282 = vmatprep.mubr.msk.bf16.mxu0 %vm2794_vm0, %v2793_v0 }
 0x404   : > { %1504 = vadd.xlane.f32.xlu1 %v1503_v53  ;;  %2286 = vmatprep.subr.bf16.mxu1 %v2793_v0 }
 0x407   : > { %v2442_v54 = vpop.eup %2441 }
 0x408   : > { %v2444_v55 = vpop.eup %2443  ;;  %2277 = vmatmul.mubr.msk.bf16.vlgmr.msra.gmra.mrb[16].mxu1 %vm1279_vm3, %v2442_v54  ;;  %v1498_v56 = vunpack.c.l.bf16 %v2442_v54 }
 0x409   : > { %2283 = vmatmul.mubr.msk.bf16.vlgmr.msra.gmra.mrb[20].mxu0 %vm1279_vm3, %v2444_v55  ;;  %v1499_v57 = vunpack.c.l.bf16 %v2444_v55  ;;  %2290 = vmatprep.mubr.msk.bf16.mxu1 %vm2794_vm0, %v2793_v0 }
 0x40a   : > { %v1506_v58 = vsel %vm1279_vm3, %v1498_v56, 0.0  ;;  %2287 = vmatpush3.bf16.msra.mxu1 %v2435_v37 }
 0x40b   : > { %1507 = vadd.xlane.f32.xlu0 %v1506_v58  ;;  %v1509_v59 = vsel %vm1279_vm3, %v1499_v57, 0.0  ;;  %2288 = vmatprep.subr.bf16.mxu1 %v2793_v0 }
 0x40c   : > { %1510 = vadd.xlane.f32.xlu1 %v1509_v59 }
 0x40e   : > { %2289 = vmatpush3.bf16.msra.mxu1 %v2436_v48 }
 0x490   : > { %v1502_v60 = vpop.xlane.xlu0 %1501 }
 0x491   : > { %v1505_v61 = vpop.xlane.xlu1 %1504  ;;  %2445 = vrcp.f32 %v1502_v60 }
 0x492   : > { %2447 = vrcp.f32 %v1505_v61 }
 0x498   : > { %v1508_v62 = vpop.xlane.xlu0 %1507 }
 0x499   : > { %v1511_v63 = vpop.xlane.xlu1 %1510  ;;  %2449 = vrcp.f32 %v1508_v62 }
 0x49a   : > { %2451 = vrcp.f32 %v1511_v63 }
 0x49b   : > { %v2446_v9 = vpop.eup %2445 }
 0x49c   : > { %v2448_v10 = vpop.eup %2447 }
 0x4a3   : > { %v2450_v11 = vpop.eup %2449 }
 0x4a4   : > { %v2452_v13 = vpop.eup %2451 }
 0x4d3   : > { %v1557_v1 = vpop.f32.mrb[12].mxu1 }
 0x4d4   : > { %v1603_v2 = vpop.f32.mrb[16].mxu0  ;;  %v2266_v3 = vpop.f32.mrb[13].mxu1  ;;  %v1705_v35 = vmul.f32 %v2446_v9, %v1557_v1 }
 0x4d5   : > { %v2272_v4 = vpop.f32.mrb[17].mxu0  ;;  %v1560_v5 = vpop.f32.mrb[14].mxu1  ;;  %v1706_v17 = vmul.f32 %v2448_v10, %v1603_v2 }
 0x4d6   : > { %v1606_v6 = vpop.f32.mrb[18].mxu0  ;;  %v2267_v7 = vpop.f32.mrb[15].mxu1 }
 0x4d7   : > { %v2273_v8 = vpop.f32.mrb[19].mxu0  ;;  %v2178_v6 = vld [vmem:[%s3539_s21] ss:$0 sm:$0xff] }
 0x4db   : > { %v1649_v12 = vpop.f32.mrb[16].mxu1 }
 0x4dc   : > { %v1707_v14 = vmul.f32 %v2450_v11, %v1649_v12  ;;  %v1695_v15 = vpop.f32.mrb[20].mxu0  ;;  %v2278_v16 = vpop.f32.mrb[17].mxu1 }
 0x4dd   : > { %v1708_v18 = vmul.f32 %v2452_v13, %v1695_v15  ;;  %v2284_v19 = vpop.f32.mrb[21].mxu0  ;;  %v1652_v20 = vpop.f32.mrb[18].mxu1 }
 0x4de   : > { %v1709_v21 = vcombine.low %v1705_v35, %v1707_v14  ;;  %v1710_v22 = vcombine.high %v1705_v35, %v1707_v14  ;;  %v1698_v23 = vpop.f32.mrb[22].mxu0  ;;  %v2279_v24 = vpop.f32.mrb[19].mxu1 }
 0x4df   : > { %v1725_v26 = vcombine.low %v1706_v17, %v1708_v18  ;;  %v1726_v27 = vcombine.high %v1706_v17, %v1708_v18  ;;  %v2285_v28 = vpop.f32.mrb[23].mxu0 }
 0x4e0   : > { %v1717_v25 = vrot.slane %v1709_v21, %v3252_v39  ;;  %v1724_v29 = vrot.slane %v1710_v22, %v3252_v39 }
 0x4e1   : > { %v1733_v30 = vrot.slane %v1725_v26, %v3252_v39  ;;  %v1740_v31 = vrot.slane %v1726_v27, %v3252_v39 }
 0x4e3   : > { %v1741_v32 = vcombine.low %v1717_v25, %v1733_v30  ;;  %v1742_v33 = vcombine.high %v1717_v25, %v1733_v30  ;;  %v1757_v34 = vcombine.low %v1724_v29, %v1740_v31  ;;  %v1758_v36 = vcombine.high %v1724_v29, %v1740_v31 }
 0x4e5   : > { %v1749_v38 = vrot.slane %v1741_v32, %v3255_v45  ;;  %v1756_v40 = vrot.slane %v1742_v33, %v3255_v45  ;;  %v1765_v41 = vrot.slane %v1757_v34, %v3255_v45  ;;  %v1772_v42 = vrot.slane %v1758_v36, %v3255_v45 }
 0x4e7   : > { %v1777_v43 = vcombine.low %v1749_v38, %v1756_v40  ;;  %v2176_v44 = vcombine.high %v1749_v38, %v1756_v40  ;;  %v1793_v46 = vcombine.low %v1765_v41, %v1772_v42  ;;  %v2177_v47 = vcombine.high %v1765_v41, %v1772_v42 }
 0x4e9   : > { %v1784_v49 = vrot.slane %v1777_v43, %v3252_v39  ;;  %v1792_v50 = vrot.slane %v2176_v44, %v3252_v39  ;;  %v1800_v51 = vrot.slane %v1793_v46, %v3252_v39  ;;  %v1808_v52 = vrot.slane %v2177_v47, %v3252_v39 }
 0x4eb   : > { %v1810_v53 = vcombine.high %v1784_v49, %v1792_v50  ;;  %v1826_v54 = vcombine.high %v1800_v51, %v1808_v52  ;;  %v1809_v0 = vcombine.low %v1784_v49, %v1792_v50  ;;  %v1825_v55 = vcombine.low %v1800_v51, %v1808_v52 }
 0x4ed   : > { %v1824_v56 = vrot.slane %v1810_v53, %v3255_v45  ;;  %v1840_v57 = vrot.slane %v1826_v54, %v3255_v45  ;;  %v1817_v58 = vrot.slane %v1809_v0, %v3255_v45  ;;  %v1833_v59 = vrot.slane %v1825_v55, %v3255_v45 }
 0x4ef   : > { %v1843_v60 = vcombine.low %v1824_v56, %v1840_v57  ;;  %v1842_v61 = vcombine.high %v1817_v58, %v1833_v59  ;;  %v1844_v62 = vcombine.high %v1824_v56, %v1840_v57  ;;  %v1841_v63 = vcombine.low %v1817_v58, %v1833_v59 }
 0x4f1   : > { %1850 = vrot.lane.b32.xlu1 %v1843_v60, %s2800_s5  ;;  %1846 = vrot.lane.b32.xlu0 %v1842_v61, %s2801_s28 }
 0x4f5   : > { %1854 = vrot.lane.b32.xlu1 %v1844_v62, %s2802_s17 }
 0x563   : > { %v1851_v39 = vpop.permute.xlu1 %1850  ;;  %v1847_v1 = vpop.permute.xlu0 %1846 }
 0x564   : > { %v1857_v2 = vsel %vm1279_vm3, %v1841_v63, %v1847_v1 }
 0x565   : > { %v1859_v45 = vsel %vm1858_vm6, %v1857_v2, %v1851_v39 }
 0x567   : > { %v1855_v3 = vpop.permute.xlu1 %1854 }
 0x568   : > { %v1861_v4 = vsel %vm1860_vm7, %v1859_v45, %v1855_v3 }
 0x569   : > { %v1862_v5 = vpack.c.bf16 %v1861_v4, %v1861_v4 }
 0x56b   : > { %2291 = vmatmul.mubr.msk.bf16.vlgmr.msra.gmra.mrb[20].mxu1 %vm628_vm1, %v1862_v5 }
 0x63e   : > { %v1923_v7 = vpop.f32.mrb[20].mxu1 }
 0x63f   : > { %v1924_v8 = vadd.f32 %v2178_v6, %v1923_v7  ;;  %v2292_v9 = vpop.f32.mrb[21].mxu1 }
 0x640   : > { %v1926_v10 = vpop.f32.mrb[22].mxu1 }
 0x641   : > { %v2293_v11 = vpop.f32.mrb[23].mxu1  ;;  %1929 = vst.msk [vmem:[%s594_s19] sm:$0xff] %vm628_vm1, %v1924_v8 }
 0x642   : > { %2696 = shalt.err (!%p2693_p9)
}
 0x643   : > { %s2697_s25 = scalar_lea.hbm %s3402_s7, 128  ;;  %s2701_s5 = scalar_lea.hbm %s3541_s18, 256 }
 0x644   : > { %p2698_p0 = scmp.ne.s32.totalorder %s3402_s7, %s2697_s25  ;;  %p2702_p13 = scmp.lt.u32.totalorder %s3402_s7, %s3541_s18 }
 0x645   : > { %p2703_p3 = scmp.lt.u32.totalorder %s2701_s5, %s2697_s25  ;;  %p2705_p1 = scmp.lt.u32.totalorder %s2697_s25, %s3402_s7 }
 0x646   : > { %p2699_p4 = pnand %p2698_p0, %p3542_p8 }
 0x647   : > { %p2704_p6 = por %p2703_p3, %p2702_p13 }
 0x648   : > { %p2700_p10 = pneg %p2699_p4 }
 0x649   : > { %p2706_p12 = por %p2705_p1, %p2704_p6 }
 0x64b   : > { %p2707_p7 = pnand %p2706_p12, %p2700_p10 }
 0x64d   : > { %2710 = shalt.err (!%p2707_p7)
}
 0x64e   : > { %2320 = dma.vmem_to_hbm [thread:$0]  (%p3542_p8), %s3404_s16, 128, %s3402_s7, %s1931_s26  }
 0x64f PF: > { %s3543_s20 = sld [smem:[#allocation25_spill]]  ;;  %s3544_s29 = sld [smem:[#allocation32_spill]] }
 0x650   : > { %s3545_s14 = sld [smem:[#allocation28_spill]] }
 0x655   : > { %s1957_s21 = sand.u32 1, %s3543_s20   ;;  %p3546_p11 = scmp.ne.s32.totalorder %s3544_s29, 0 }
 0x656   : > { %p3547_p5 = scmp.ge.s32.totalorder %s3545_s14, 2  ;;  %s1958_s27 = scalar_lea.sflag [#allocation6], %s1957_s21 }
 0x658   : > { %p2349_p2 = pnand %p3547_p5, %p3546_p11 }
 0x65a   : > { %2756 = dma.done.wait (!%p2349_p2), %s1958_s27, 128  }
 0x65b   : > { %2758 = vsyncadd (!%p2349_p2), %s1958_s27, 4294967168  ;;  %s34_s26 = sadd.s32 1, %s3545_s14   ;;  %s3548_s13 = sld [smem:[#allocation31_spill]] }
 0x65c   : > { %p31_p9 = scmp.ge.s32.totalorder %s34_s26, 4   ;;  %s3549_s24 = sld [smem:[#allocation27_spill]] }
 0x65d   : > { %s3550_s25 = sld [smem:[#allocation29_spill]]  ;;  %s3551_s21 = smov %s2765_s22 }
 0x65e   : > { %s3552_s22 = smov %s2769_s23  ;;  %33 = sbr.rel (!%p31_p9) target bundleno = 20 (0x14), region = 164 }
 0x661   : > { %s3553_s23 = smov %s3548_s13 }
 0x665   :  { %1963 = vsyncpa [#allocation5], 1 }
 0x666   :  { %1965 = vsyncpa [#allocation5 + $0x1], 1 }
 0x667   :  { %1966 = vsyncpa [#allocation8], 1 }
 0x668   :  { %1968 = vsyncpa [#allocation8 + $0x1], 1 }
 0x669   :  { %1969 = vsyncpa [#allocation11], 1 }
 0x66a   :  { %1970 = vsyncpa [#allocation14], 1 }
 0x66b   :  { %1971 = vsyncpa [#allocation17], 1 }
 0x66c   :  { %1972 = vsyncpa [#allocation6], 1 }
 0x66d   :  { %1974 = vsyncpa [#allocation6 + $0x1], 1 }

</bundles_post_ra>
